<compile_context>
chip_gen: v7x
topology: tpu7x:2x2x1
jax: 0.10.0
libtpu: 0.0.40
codegen_flags: <defaults>
</compile_context>

<pallas_src>
import functools

import jax
import jax.numpy as jnp
from jax.experimental import pallas as pl
from jax.experimental.pallas import tpu as pltpu


# ----------------------------------------------------------------------------
# Glue: dense bilinear interpolation matrix (align_corners=True), shape (out, in)
# ----------------------------------------------------------------------------
def _interp_matrix(out_size: int, in_size: int) -> jnp.ndarray:
    if out_size == 1:
        coords = jnp.zeros((1,), jnp.float32)
    else:
        coords = jnp.arange(out_size, dtype=jnp.float32) * (
            (in_size - 1) / (out_size - 1)
        )
    lo = jnp.clip(jnp.floor(coords).astype(jnp.int32), 0, in_size - 1)
    hi = jnp.minimum(lo + 1, in_size - 1)
    frac = coords - lo.astype(jnp.float32)
    w_lo = jax.nn.one_hot(lo, in_size, dtype=jnp.float32) * (1.0 - frac)[:, None]
    w_hi = jax.nn.one_hot(hi, in_size, dtype=jnp.float32) * frac[:, None]
    return w_lo + w_hi


# ----------------------------------------------------------------------------
# Device-aware sizing helpers
# ----------------------------------------------------------------------------
def _vmem_limit_bytes() -> int:
    cap = 64 * 1024 * 1024
    try:
        info = pltpu.get_tpu_info()
        cap = int(getattr(info, "vmem_capacity_bytes", cap))
    except Exception:
        pass
    # ~25% headroom for pipeline buffers / compiler-internal scratch:
    # 96 MiB on 128 MiB parts (v5e/v6e), 48 MiB on 64 MiB parts (v7x).
    return max(32 * 1024 * 1024, min((cap * 3) // 4, 100 * 1024 * 1024))


def _choose_tile_h(H: int, tile_h=None) -> int:
    if tile_h is not None:
        assert H % tile_h == 0, "tile_h must divide H"
        return tile_h
    if H % 8 != 0:
        return H
    # TH<=64 keeps the per-chunk softmax state (m/se/picked on (TH,128) slabs)
    # inside the 64-vreg budget.
    for cand in (64, 32, 16, 8):
        if cand <= H and H % cand == 0:
            return cand
    return H


def _choose_chunk_w(W: int) -> int:
    if W % 128 == 0:
        return 128
    # TODO(synk): pad W to a multiple of 128 for odd widths instead of one chunk.
    return W


def _choose_section(NWC: int, K: int, h: int, Wc: int, vmem_limit: int) -> int:
    """How many W-chunks of the cached W-resize are kept resident at once."""
    budget = max(vmem_limit // 3, 2 * 1024 * 1024)
    bytes_per_chunk = K * h * Wc * 2  # bf16
    for cand in range(NWC, 0, -1):
        if NWC % cand == 0 and (cand * bytes_per_chunk <= budget or cand == 1):
            return cand
    return 1


def _fold(x, acc_r: int, acc_c: int):
    """Reduce (R, C) -> (acc_r, acc_c) using only aligned-slab elementwise adds
    (no cross-lane / XLU reductions)."""
    R, C = x.shape
    if R != acc_r:
        y = x[0:acc_r, :]
        for g in range(1, R // acc_r):
            y = y + x[g * acc_r:(g + 1) * acc_r, :]
        x = y
    if C != acc_c:
        y = x[:, 0:acc_c]
        for g in range(1, C // acc_c):
            y = y + x[:, g * acc_c:(g + 1) * acc_c]
        x = y
    return x


# ----------------------------------------------------------------------------
# Kernel: grid = (head, batch, W-section, H-tile)
#   pred_ref   : (K, h, w)              bf16   native NCHW block (resident)
#   target_ref : (NWC_sec, TH, Wc)      int32  W-chunk-major target rows
#   wh_ref     : (TH, h)                bf16   H-resize rows for this tile
#   wwt_ref    : (w, NWC_sec*Wc)        bf16   W-resize columns of this section
#   loss_ref, cnt_ref : (acc_r, acc_c)  f32    resident per-(head,batch) accumulators
#   t_scratch  : (NWC_sec, h, K*Wc)     bf16   chunk-major cached W-resized logits
# ----------------------------------------------------------------------------
def _ce_kernel(pred_ref, target_ref, wh_ref, wwt_ref,
               loss_ref, cnt_ref, t_scratch, *,
               ignore_index, K, Wc, NWC_sec, acc_r, acc_c):
    sec = pl.program_id(2)
    t = pl.program_id(3)

    TH, h = wh_ref.shape

    # Zero this (head, batch)'s resident accumulator blocks once.
    @pl.when((sec == 0) & (t == 0))
    def _init():
        loss_ref[...] = jnp.zeros_like(loss_ref)
        cnt_ref[...] = jnp.zeros_like(cnt_ref)

    # W-resize for this section, once per (head, batch, section).  Chunk-major
    # layout: t_scratch[j, :, k*Wc:(k+1)*Wc] holds class k of W-chunk j, so the
    # hot loop below runs ONE (TH,h)x(h,K*Wc) MXU matmul per chunk.
    # TODO(synk): overlap this with the previous batch's last H-tile by
    # double-buffering t_scratch.
    @pl.when(t == 0)
    def _resize_w():
        for j in range(NWC_sec):
            wcol = wwt_ref[:, j * Wc:(j + 1) * Wc]               # (w, Wc)
            for k in range(K):
                t_scratch[j, :, k * Wc:(k + 1) * Wc] = jnp.dot(
                    pred_ref[k], wcol, preferred_element_type=jnp.float32
                ).astype(t_scratch.dtype)

    wh_t = wh_ref[...]                                           # (TH, h) bf16

    def _chunk(jj):
        # One batched MXU matmul for all K classes of this W-chunk.
        logits = jnp.dot(wh_t, t_scratch[jj],
                         preferred_element_type=jnp.float32)     # (TH, K*Wc) f32
        tgt_c = target_ref[jj]                                   # (TH, Wc) int32

        # Two-pass logsumexp: pass 1 = max over classes.
        m = logits[:, 0:Wc]
        for k in range(1, K):
            m = jnp.maximum(m, logits[:, k * Wc:(k + 1) * Wc])
        # Pass 2 = sum of exp + pick the target-class logit.
        se = jnp.zeros((TH, Wc), jnp.float32)
        picked = jnp.zeros((TH, Wc), jnp.float32)
        for k in range(K):
            lk = logits[:, k * Wc:(k + 1) * Wc]
            se = se + jnp.exp(lk - m)
            picked = picked + jnp.where(tgt_c == k, lk, 0.0)

        lse = m + jnp.log(se)
        valid = tgt_c != ignore_index
        pix = jnp.where(valid, lse - picked, 0.0)

        # Lane-dense accumulation directly into the resident output blocks
        # (pure VALU adds; final cross-lane reduction is done in the wrapper).
        loss_ref[...] = loss_ref[...] + _fold(pix, acc_r, acc_c)
        cnt_ref[...] = cnt_ref[...] + _fold(valid.astype(jnp.float32),
                                            acc_r, acc_c)

    if NWC_sec == 1:
        _chunk(0)
    else:
        def _body(jj, carry):
            _chunk(jj)
            return carry
        jax.lax.fori_loop(0, NWC_sec, _body, 0)


# ----------------------------------------------------------------------------
# Wrapper: one pallas_call for main (+ optional aux) heads.
# ----------------------------------------------------------------------------
def ce_loss(pred, target, aux_pred=None, ignore_index=255, tile_h=None):
    """JAX/Pallas equivalent of CELoss.forward (reduction='mean')."""
    # TODO(synk): only reduction='mean' is implemented (what the module uses);
    # torch.distributed is unused by the reference forward.
    if aux_pred is None:
        preds = pred[None]                                   # (1, B, K, h, w)
    else:
        preds = jnp.stack([pred, aux_pred], axis=0)          # (2, B, K, h, w)

    S, B, K, h, w = preds.shape
    tB, H, W = target.shape
    assert tB == B

    vmem_limit = _vmem_limit_bytes()
    TH = _choose_tile_h(H, tile_h)
    NH = H // TH
    Wc = _choose_chunk_w(W)
    NWC = W // Wc
    NWC_sec = _choose_section(NWC, K, h, Wc, vmem_limit)
    NWSEC = NWC // NWC_sec

    acc_r = 8 if TH % 8 == 0 else TH
    acc_c = 128 if Wc % 128 == 0 else Wc

    # bf16 MXU operands (f32 accumulation inside the kernel).
    # TODO(synk): keep t_scratch / resize matrices in f32 if large-magnitude
    # logits make the double bf16 rounding of the cached W-resize too lossy.
    preds_bf = preds.astype(jnp.bfloat16)                    # (S, B, K, h, w)
    wh = _interp_matrix(H, h).astype(jnp.bfloat16)           # (H, h)
    wwt = _interp_matrix(W, w).T.astype(jnp.bfloat16)        # (w, W)
    # Put the W-chunk on a leading axis so the kernel never dynamically slices
    # the lane dimension (free reshape + cheap transpose fused by XLA).
    tgt = target.astype(jnp.int32).reshape(B, H, NWC, Wc).transpose(0, 2, 1, 3)

    kern = functools.partial(_ce_kernel, ignore_index=ignore_index, K=K, Wc=Wc,
                             NWC_sec=NWC_sec, acc_r=acc_r, acc_c=acc_c)

    loss_acc, cnt_acc = pl.pallas_call(
        kern,
        out_shape=[
            jax.ShapeDtypeStruct((S, B, acc_r, acc_c), jnp.float32),
            jax.ShapeDtypeStruct((S, B, acc_r, acc_c), jnp.float32),
        ],
        grid_spec=pltpu.PrefetchScalarGridSpec(
            num_scalar_prefetch=0,
            grid=(S, B, NWSEC, NH),
            in_specs=[
                # pred in native NCHW; resident across section / H-tile axes.
                pl.BlockSpec((None, None, K, h, w),
                             lambda s, b, sec, t: (s, b, 0, 0, 0)),
                # target: all W-chunks of this section for TH output rows.
                pl.BlockSpec((None, NWC_sec, TH, Wc),
                             lambda s, b, sec, t: (b, sec, t, 0)),
                # matching rows of the H-resize matrix.
                pl.BlockSpec((TH, h), lambda s, b, sec, t: (t, 0)),
                # W-resize matrix columns for this section.
                pl.BlockSpec((w, NWC_sec * Wc), lambda s, b, sec, t: (0, sec)),
            ],
            out_specs=[
                pl.BlockSpec((None, None, acc_r, acc_c),
                             lambda s, b, sec, t: (s, b, 0, 0)),
                pl.BlockSpec((None, None, acc_r, acc_c),
                             lambda s, b, sec, t: (s, b, 0, 0)),
            ],
            scratch_shapes=[
                # chunk-major cached W-resized logits for the current section
                pltpu.VMEM((NWC_sec, h, K * Wc), jnp.bfloat16),
            ],
        ),
        compiler_params=pltpu.CompilerParams(
            # head AND batch parallel (both v7x TensorCores used even with no aux
            # head); section / H-tile are the sequential accumulation axes.
            dimension_semantics=("parallel", "parallel", "arbitrary", "arbitrary"),
            vmem_limit_bytes=vmem_limit,
        ),
    )(preds_bf, tgt, wh, wwt)

    # Tiny epilogue: fold the lane-dense per-(head, batch) partial sums.
    loss_sum = jnp.sum(loss_acc, axis=(1, 2, 3))             # (S,)
    cnt_sum = jnp.sum(cnt_acc, axis=(1, 2, 3))               # (S,)
    # NOTE: if every pixel is ignore_index, cnt==0 and this is NaN — same
    # degenerate behavior as PyTorch's reduction='mean'.
    losses = loss_sum / cnt_sum
    main_loss = losses[0]
    if aux_pred is not None:
        aux_loss = losses[1]
        total_loss = main_loss + 0.4 * aux_loss
        return {"total_loss": total_loss, "main_loss": main_loss,
                "aux_loss": aux_loss}
    return {"total_loss": main_loss}


# ----------------------------------------------------------------------------
# Pure-JAX reference (sanity check only).
# ----------------------------------------------------------------------------
def _ref_loss(pred, target, ignore_index):
    B, K, h, w = pred.shape
    _, H, W = target.shape
    wh = _interp_matrix(H, h)
    ww = _interp_matrix(W, w)
    logits = jnp.einsum("Hh,bkhw,Ww->bkHW", wh, pred.astype(jnp.float32), ww)
    lse = jax.scipy.special.logsumexp(logits, axis=1)
    onehot = jax.nn.one_hot(target, K, axis=1, dtype=jnp.float32)
    picked = jnp.sum(logits * onehot, axis=1)
    valid = target != ignore_index
    losses = jnp.where(valid, lse - picked, 0.0)
    return jnp.sum(losses) / jnp.sum(valid.astype(jnp.float32))


if __name__ == "__main__":
    key = jax.random.PRNGKey(0)
    k1, k2, k3, k4 = jax.random.split(key, 4)

    B, K, h, w = 2, 8, 8, 8      # pred: [B x K x h x w]
    H, W = 32, 32                # target: [B x H x W]
    ignore_index = 255

    pred = jax.random.normal(k1, (B, K, h, w), jnp.float32)
    aux_pred = jax.random.normal(k2, (B, K, h, w), jnp.float32)
    target = jax.random.randint(k3, (B, H, W), 0, K, jnp.int32)
    ignore_mask = jax.random.uniform(k4, (B, H, W)) < 0.2
    target = jnp.where(ignore_mask, ignore_index, target)

    # Main + aux heads fused in one pallas_call; tile_h=16 exercises H-tiling.
    out = ce_loss(pred, target, aux_pred=aux_pred,
                  ignore_index=ignore_index, tile_h=16)
    out = jax.block_until_ready(out)

    # Also exercise the main-only (S=1) path.
    out_main_only = ce_loss(pred, target, ignore_index=ignore_index, tile_h=16)
    out_main_only = jax.block_until_ready(out_main_only)

    # Sanity check vs pure-JAX f32 reference (kernel uses bf16 MXU operands).
    ref_main = _ref_loss(pred, target, ignore_index)
    ref_aux = _ref_loss(aux_pred, target, ignore_index)
    ref_total = ref_main + 0.4 * ref_aux
    assert abs(float(out["main_loss"]) - float(ref_main)) < 2e-2
    assert abs(float(out["aux_loss"]) - float(ref_aux)) < 2e-2
    assert abs(float(out["total_loss"]) - float(ref_total)) < 2e-2
    assert abs(float(out_main_only["total_loss"]) - float(ref_main)) < 2e-2

    print("KERNEL_OK")
</pallas_src>

<mosaic_0001>
module attributes {stable_mosaic.version = 11 : i64} {
  func.func @_ce_kernel(%arg0: i32, %arg1: i32, %arg2: i32, %arg3: i32, %arg4: memref<1x1x8x8x8xbf16, #tpu.memory_space<vmem>>, %arg5: memref<1x1x16x32xi32, #tpu.memory_space<vmem>>, %arg6: memref<16x8xbf16, #tpu.memory_space<vmem>>, %arg7: memref<8x32xbf16, #tpu.memory_space<vmem>>, %arg8: memref<1x1x8x32xf32, #tpu.memory_space<vmem>>, %arg9: memref<1x1x8x32xf32, #tpu.memory_space<vmem>>, %arg10: memref<1x8x256xbf16, #tpu.memory_space<vmem>>) attributes {dimension_semantics = [#tpu.dimension_semantics<parallel>, #tpu.dimension_semantics<parallel>, #tpu.dimension_semantics<arbitrary>, #tpu.dimension_semantics<arbitrary>], iteration_bounds = array<i64: 2, 2, 1, 2>, scalar_prefetch = 0 : i64, scratch_operands = 1 : i64, tpu.core_type = #tpu.core_type<tc>, window_params = [{transform_indices = @transform_0, window_bounds = array<i64: 1, 1, 8, 8, 8>}, {transform_indices = @transform_1, window_bounds = array<i64: 1, 1, 16, 32>}, {transform_indices = @transform_2, window_bounds = array<i64: 16, 8>}, {transform_indices = @transform_3, window_bounds = array<i64: 8, 32>}, {transform_indices = @transform_4, window_bounds = array<i64: 1, 1, 8, 32>}, {transform_indices = @transform_5, window_bounds = array<i64: 1, 1, 8, 32>}]} {
    %c0_i32 = arith.constant 0 : i32
    %0 = arith.cmpi eq, %arg2, %c0_i32 : i32
    %c0_i32_0 = arith.constant 0 : i32
    %1 = arith.cmpi eq, %arg3, %c0_i32_0 : i32
    %2 = arith.andi %0, %1 : i1
    %3 = arith.extui %2 : i1 to i32
    %c0_i32_1 = arith.constant 0 : i32
    %4 = arith.cmpi ne, %3, %c0_i32_1 : i32
    scf.if %4 {
      %cst_40 = arith.constant 0.000000e+00 : f32
      %130 = vector.broadcast %cst_40 : f32 to vector<8x32xf32>
      %c0_41 = arith.constant 0 : index
      %c0_42 = arith.constant 0 : index
      %c0_43 = arith.constant 0 : index
      %c0_44 = arith.constant 0 : index
      %131 = vector.load %arg8[%c0_41, %c0_42, %c0_43, %c0_44] : memref<1x1x8x32xf32, #tpu.memory_space<vmem>>, vector<1x1x8x32xf32>
      %132 = vector.shape_cast %131 : vector<1x1x8x32xf32> to vector<8x32xf32>
      %133 = vector.shape_cast %130 : vector<8x32xf32> to vector<1x1x8x32xf32>
      tpu.vector_store %arg8[%c0_41, %c0_42, %c0_43, %c0_44], %133 {strides = array<i32>} : memref<1x1x8x32xf32, #tpu.memory_space<vmem>>, vector<1x1x8x32xf32>,
      %cst_45 = arith.constant 0.000000e+00 : f32
      %134 = vector.broadcast %cst_45 : f32 to vector<8x32xf32>
      %c0_46 = arith.constant 0 : index
      %c0_47 = arith.constant 0 : index
      %c0_48 = arith.constant 0 : index
      %c0_49 = arith.constant 0 : index
      %135 = vector.load %arg9[%c0_46, %c0_47, %c0_48, %c0_49] : memref<1x1x8x32xf32, #tpu.memory_space<vmem>>, vector<1x1x8x32xf32>
      %136 = vector.shape_cast %135 : vector<1x1x8x32xf32> to vector<8x32xf32>
      %137 = vector.shape_cast %134 : vector<8x32xf32> to vector<1x1x8x32xf32>
      tpu.vector_store %arg9[%c0_46, %c0_47, %c0_48, %c0_49], %137 {strides = array<i32>} : memref<1x1x8x32xf32, #tpu.memory_space<vmem>>, vector<1x1x8x32xf32>,
    } else {
    }
    %c0_i32_2 = arith.constant 0 : i32
    %5 = arith.cmpi eq, %arg3, %c0_i32_2 : i32
    %6 = arith.extui %5 : i1 to i32
    %c0_i32_3 = arith.constant 0 : i32
    %7 = arith.cmpi ne, %6, %c0_i32_3 : i32
    scf.if %7 {
      %c0_40 = arith.constant 0 : index
      %c0_41 = arith.constant 0 : index
      %130 = vector.load %arg7[%c0_40, %c0_41] : memref<8x32xbf16, #tpu.memory_space<vmem>>, vector<8x32xbf16>
      %c0_42 = arith.constant 0 : index
      %c0_43 = arith.constant 0 : index
      %c0_44 = arith.constant 0 : index
      %c0_45 = arith.constant 0 : index
      %c0_46 = arith.constant 0 : index
      %131 = vector.load %arg4[%c0_42, %c0_43, %c0_44, %c0_45, %c0_46] : memref<1x1x8x8x8xbf16, #tpu.memory_space<vmem>>, vector<1x1x1x8x8xbf16>
      %132 = vector.shape_cast %131 : vector<1x1x1x8x8xbf16> to vector<8x8xbf16>
      %cst_47 = arith.constant dense<0.000000e+00> : vector<8x32xf32>
      %133 = tpu.matmul %132, %130, %cst_47 {dimension_numbers = #tpu.dot_dimension_numbers<[1], [0], [0], [1], [0, 0, 1, 1], [], []>} : vector<8x8xbf16>, vector<8x32xbf16>, vector<8x32xf32> -> vector<8x32xf32>
      %134 = arith.truncf %133 : vector<8x32xf32> to vector<8x32xbf16>
      %c0_48 = arith.constant 0 : index
      %c0_49 = arith.constant 0 : index
      %c0_50 = arith.constant 0 : index
      %135 = vector.load %arg10[%c0_48, %c0_49, %c0_50] : memref<1x8x256xbf16, #tpu.memory_space<vmem>>, vector<1x8x32xbf16>
      %136 = vector.shape_cast %135 : vector<1x8x32xbf16> to vector<8x32xbf16>
      %137 = vector.shape_cast %134 : vector<8x32xbf16> to vector<1x8x32xbf16>
      tpu.vector_store %arg10[%c0_48, %c0_49, %c0_50], %137 {strides = array<i32>} : memref<1x8x256xbf16, #tpu.memory_space<vmem>>, vector<1x8x32xbf16>,
      %c0_51 = arith.constant 0 : index
      %c0_52 = arith.constant 0 : index
      %c1 = arith.constant 1 : index
      %c0_53 = arith.constant 0 : index
      %c0_54 = arith.constant 0 : index
      %138 = vector.load %arg4[%c0_51, %c0_52, %c1, %c0_53, %c0_54] : memref<1x1x8x8x8xbf16, #tpu.memory_space<vmem>>, vector<1x1x1x8x8xbf16>
      %139 = vector.shape_cast %138 : vector<1x1x1x8x8xbf16> to vector<8x8xbf16>
      %cst_55 = arith.constant dense<0.000000e+00> : vector<8x32xf32>
      %140 = tpu.matmul %139, %130, %cst_55 {dimension_numbers = #tpu.dot_dimension_numbers<[1], [0], [0], [1], [0, 0, 1, 1], [], []>} : vector<8x8xbf16>, vector<8x32xbf16>, vector<8x32xf32> -> vector<8x32xf32>
      %141 = arith.truncf %140 : vector<8x32xf32> to vector<8x32xbf16>
      %c0_56 = arith.constant 0 : index
      %c0_57 = arith.constant 0 : index
      %c32 = arith.constant 32 : index
      %142 = vector.load %arg10[%c0_56, %c0_57, %c32] : memref<1x8x256xbf16, #tpu.memory_space<vmem>>, vector<1x8x32xbf16>
      %143 = vector.shape_cast %142 : vector<1x8x32xbf16> to vector<8x32xbf16>
      %144 = vector.shape_cast %141 : vector<8x32xbf16> to vector<1x8x32xbf16>
      tpu.vector_store %arg10[%c0_56, %c0_57, %c32], %144 {strides = array<i32>} : memref<1x8x256xbf16, #tpu.memory_space<vmem>>, vector<1x8x32xbf16>,
      %c0_58 = arith.constant 0 : index
      %c0_59 = arith.constant 0 : index
      %c2 = arith.constant 2 : index
      %c0_60 = arith.constant 0 : index
      %c0_61 = arith.constant 0 : index
      %145 = vector.load %arg4[%c0_58, %c0_59, %c2, %c0_60, %c0_61] : memref<1x1x8x8x8xbf16, #tpu.memory_space<vmem>>, vector<1x1x1x8x8xbf16>
      %146 = vector.shape_cast %145 : vector<1x1x1x8x8xbf16> to vector<8x8xbf16>
      %cst_62 = arith.constant dense<0.000000e+00> : vector<8x32xf32>
      %147 = tpu.matmul %146, %130, %cst_62 {dimension_numbers = #tpu.dot_dimension_numbers<[1], [0], [0], [1], [0, 0, 1, 1], [], []>} : vector<8x8xbf16>, vector<8x32xbf16>, vector<8x32xf32> -> vector<8x32xf32>
      %148 = arith.truncf %147 : vector<8x32xf32> to vector<8x32xbf16>
      %c0_63 = arith.constant 0 : index
      %c0_64 = arith.constant 0 : index
      %c64 = arith.constant 64 : index
      %149 = vector.load %arg10[%c0_63, %c0_64, %c64] : memref<1x8x256xbf16, #tpu.memory_space<vmem>>, vector<1x8x32xbf16>
      %150 = vector.shape_cast %149 : vector<1x8x32xbf16> to vector<8x32xbf16>
      %151 = vector.shape_cast %148 : vector<8x32xbf16> to vector<1x8x32xbf16>
      tpu.vector_store %arg10[%c0_63, %c0_64, %c64], %151 {strides = array<i32>} : memref<1x8x256xbf16, #tpu.memory_space<vmem>>, vector<1x8x32xbf16>,
      %c0_65 = arith.constant 0 : index
      %c0_66 = arith.constant 0 : index
      %c3 = arith.constant 3 : index
      %c0_67 = arith.constant 0 : index
      %c0_68 = arith.constant 0 : index
      %152 = vector.load %arg4[%c0_65, %c0_66, %c3, %c0_67, %c0_68] : memref<1x1x8x8x8xbf16, #tpu.memory_space<vmem>>, vector<1x1x1x8x8xbf16>
      %153 = vector.shape_cast %152 : vector<1x1x1x8x8xbf16> to vector<8x8xbf16>
      %cst_69 = arith.constant dense<0.000000e+00> : vector<8x32xf32>
      %154 = tpu.matmul %153, %130, %cst_69 {dimension_numbers = #tpu.dot_dimension_numbers<[1], [0], [0], [1], [0, 0, 1, 1], [], []>} : vector<8x8xbf16>, vector<8x32xbf16>, vector<8x32xf32> -> vector<8x32xf32>
      %155 = arith.truncf %154 : vector<8x32xf32> to vector<8x32xbf16>
      %c0_70 = arith.constant 0 : index
      %c0_71 = arith.constant 0 : index
      %c96 = arith.constant 96 : index
      %156 = vector.load %arg10[%c0_70, %c0_71, %c96] : memref<1x8x256xbf16, #tpu.memory_space<vmem>>, vector<1x8x32xbf16>
      %157 = vector.shape_cast %156 : vector<1x8x32xbf16> to vector<8x32xbf16>
      %158 = vector.shape_cast %155 : vector<8x32xbf16> to vector<1x8x32xbf16>
      tpu.vector_store %arg10[%c0_70, %c0_71, %c96], %158 {strides = array<i32>} : memref<1x8x256xbf16, #tpu.memory_space<vmem>>, vector<1x8x32xbf16>,
      %c0_72 = arith.constant 0 : index
      %c0_73 = arith.constant 0 : index
      %c4 = arith.constant 4 : index
      %c0_74 = arith.constant 0 : index
      %c0_75 = arith.constant 0 : index
      %159 = vector.load %arg4[%c0_72, %c0_73, %c4, %c0_74, %c0_75] : memref<1x1x8x8x8xbf16, #tpu.memory_space<vmem>>, vector<1x1x1x8x8xbf16>
      %160 = vector.shape_cast %159 : vector<1x1x1x8x8xbf16> to vector<8x8xbf16>
      %cst_76 = arith.constant dense<0.000000e+00> : vector<8x32xf32>
      %161 = tpu.matmul %160, %130, %cst_76 {dimension_numbers = #tpu.dot_dimension_numbers<[1], [0], [0], [1], [0, 0, 1, 1], [], []>} : vector<8x8xbf16>, vector<8x32xbf16>, vector<8x32xf32> -> vector<8x32xf32>
      %162 = arith.truncf %161 : vector<8x32xf32> to vector<8x32xbf16>
      %c0_77 = arith.constant 0 : index
      %c0_78 = arith.constant 0 : index
      %c128 = arith.constant 128 : index
      %163 = vector.load %arg10[%c0_77, %c0_78, %c128] : memref<1x8x256xbf16, #tpu.memory_space<vmem>>, vector<1x8x32xbf16>
      %164 = vector.shape_cast %163 : vector<1x8x32xbf16> to vector<8x32xbf16>
      %165 = vector.shape_cast %162 : vector<8x32xbf16> to vector<1x8x32xbf16>
      tpu.vector_store %arg10[%c0_77, %c0_78, %c128], %165 {strides = array<i32>} : memref<1x8x256xbf16, #tpu.memory_space<vmem>>, vector<1x8x32xbf16>,
      %c0_79 = arith.constant 0 : index
      %c0_80 = arith.constant 0 : index
      %c5 = arith.constant 5 : index
      %c0_81 = arith.constant 0 : index
      %c0_82 = arith.constant 0 : index
      %166 = vector.load %arg4[%c0_79, %c0_80, %c5, %c0_81, %c0_82] : memref<1x1x8x8x8xbf16, #tpu.memory_space<vmem>>, vector<1x1x1x8x8xbf16>
      %167 = vector.shape_cast %166 : vector<1x1x1x8x8xbf16> to vector<8x8xbf16>
      %cst_83 = arith.constant dense<0.000000e+00> : vector<8x32xf32>
      %168 = tpu.matmul %167, %130, %cst_83 {dimension_numbers = #tpu.dot_dimension_numbers<[1], [0], [0], [1], [0, 0, 1, 1], [], []>} : vector<8x8xbf16>, vector<8x32xbf16>, vector<8x32xf32> -> vector<8x32xf32>
      %169 = arith.truncf %168 : vector<8x32xf32> to vector<8x32xbf16>
      %c0_84 = arith.constant 0 : index
      %c0_85 = arith.constant 0 : index
      %c160 = arith.constant 160 : index
      %170 = vector.load %arg10[%c0_84, %c0_85, %c160] : memref<1x8x256xbf16, #tpu.memory_space<vmem>>, vector<1x8x32xbf16>
      %171 = vector.shape_cast %170 : vector<1x8x32xbf16> to vector<8x32xbf16>
      %172 = vector.shape_cast %169 : vector<8x32xbf16> to vector<1x8x32xbf16>
      tpu.vector_store %arg10[%c0_84, %c0_85, %c160], %172 {strides = array<i32>} : memref<1x8x256xbf16, #tpu.memory_space<vmem>>, vector<1x8x32xbf16>,
      %c0_86 = arith.constant 0 : index
      %c0_87 = arith.constant 0 : index
      %c6 = arith.constant 6 : index
      %c0_88 = arith.constant 0 : index
      %c0_89 = arith.constant 0 : index
      %173 = vector.load %arg4[%c0_86, %c0_87, %c6, %c0_88, %c0_89] : memref<1x1x8x8x8xbf16, #tpu.memory_space<vmem>>, vector<1x1x1x8x8xbf16>
      %174 = vector.shape_cast %173 : vector<1x1x1x8x8xbf16> to vector<8x8xbf16>
      %cst_90 = arith.constant dense<0.000000e+00> : vector<8x32xf32>
      %175 = tpu.matmul %174, %130, %cst_90 {dimension_numbers = #tpu.dot_dimension_numbers<[1], [0], [0], [1], [0, 0, 1, 1], [], []>} : vector<8x8xbf16>, vector<8x32xbf16>, vector<8x32xf32> -> vector<8x32xf32>
      %176 = arith.truncf %175 : vector<8x32xf32> to vector<8x32xbf16>
      %c0_91 = arith.constant 0 : index
      %c0_92 = arith.constant 0 : index
      %c192 = arith.constant 192 : index
      %177 = vector.load %arg10[%c0_91, %c0_92, %c192] : memref<1x8x256xbf16, #tpu.memory_space<vmem>>, vector<1x8x32xbf16>
      %178 = vector.shape_cast %177 : vector<1x8x32xbf16> to vector<8x32xbf16>
      %179 = vector.shape_cast %176 : vector<8x32xbf16> to vector<1x8x32xbf16>
      tpu.vector_store %arg10[%c0_91, %c0_92, %c192], %179 {strides = array<i32>} : memref<1x8x256xbf16, #tpu.memory_space<vmem>>, vector<1x8x32xbf16>,
      %c0_93 = arith.constant 0 : index
      %c0_94 = arith.constant 0 : index
      %c7 = arith.constant 7 : index
      %c0_95 = arith.constant 0 : index
      %c0_96 = arith.constant 0 : index
      %180 = vector.load %arg4[%c0_93, %c0_94, %c7, %c0_95, %c0_96] : memref<1x1x8x8x8xbf16, #tpu.memory_space<vmem>>, vector<1x1x1x8x8xbf16>
      %181 = vector.shape_cast %180 : vector<1x1x1x8x8xbf16> to vector<8x8xbf16>
      %cst_97 = arith.constant dense<0.000000e+00> : vector<8x32xf32>
      %182 = tpu.matmul %181, %130, %cst_97 {dimension_numbers = #tpu.dot_dimension_numbers<[1], [0], [0], [1], [0, 0, 1, 1], [], []>} : vector<8x8xbf16>, vector<8x32xbf16>, vector<8x32xf32> -> vector<8x32xf32>
      %183 = arith.truncf %182 : vector<8x32xf32> to vector<8x32xbf16>
      %c0_98 = arith.constant 0 : index
      %c0_99 = arith.constant 0 : index
      %c224 = arith.constant 224 : index
      %184 = vector.load %arg10[%c0_98, %c0_99, %c224] : memref<1x8x256xbf16, #tpu.memory_space<vmem>>, vector<1x8x32xbf16>
      %185 = vector.shape_cast %184 : vector<1x8x32xbf16> to vector<8x32xbf16>
      %186 = vector.shape_cast %183 : vector<8x32xbf16> to vector<1x8x32xbf16>
      tpu.vector_store %arg10[%c0_98, %c0_99, %c224], %186 {strides = array<i32>} : memref<1x8x256xbf16, #tpu.memory_space<vmem>>, vector<1x8x32xbf16>,
    } else {
    }
    %c0 = arith.constant 0 : index
    %c0_4 = arith.constant 0 : index
    %8 = vector.load %arg6[%c0, %c0_4] : memref<16x8xbf16, #tpu.memory_space<vmem>>, vector<16x8xbf16>
    %c0_5 = arith.constant 0 : index
    %c0_6 = arith.constant 0 : index
    %c0_7 = arith.constant 0 : index
    %9 = vector.load %arg10[%c0_5, %c0_6, %c0_7] : memref<1x8x256xbf16, #tpu.memory_space<vmem>>, vector<1x8x256xbf16>
    %10 = vector.shape_cast %9 : vector<1x8x256xbf16> to vector<8x256xbf16>
    %cst = arith.constant dense<0.000000e+00> : vector<16x256xf32>
    %11 = tpu.matmul %8, %10, %cst {dimension_numbers = #tpu.dot_dimension_numbers<[1], [0], [0], [1], [0, 0, 1, 1], [], []>} : vector<16x8xbf16>, vector<8x256xbf16>, vector<16x256xf32> -> vector<16x256xf32>
    %c0_8 = arith.constant 0 : index
    %c0_9 = arith.constant 0 : index
    %c0_10 = arith.constant 0 : index
    %c0_11 = arith.constant 0 : index
    %12 = vector.load %arg5[%c0_8, %c0_9, %c0_10, %c0_11] : memref<1x1x16x32xi32, #tpu.memory_space<vmem>>, vector<1x1x16x32xi32>
    %13 = vector.shape_cast %12 : vector<1x1x16x32xi32> to vector<16x32xi32>
    %14 = vector.extract_strided_slice %11 {offsets = [0, 0], sizes = [16, 32], strides = [1, 1]} : vector<16x256xf32> to vector<16x32xf32>
    %15 = vector.extract_strided_slice %11 {offsets = [0, 32], sizes = [16, 32], strides = [1, 1]} : vector<16x256xf32> to vector<16x32xf32>
    %16 = arith.maximumf %14, %15 : vector<16x32xf32>
    %17 = vector.extract_strided_slice %11 {offsets = [0, 64], sizes = [16, 32], strides = [1, 1]} : vector<16x256xf32> to vector<16x32xf32>
    %18 = arith.maximumf %16, %17 : vector<16x32xf32>
    %19 = vector.extract_strided_slice %11 {offsets = [0, 96], sizes = [16, 32], strides = [1, 1]} : vector<16x256xf32> to vector<16x32xf32>
    %20 = arith.maximumf %18, %19 : vector<16x32xf32>
    %21 = vector.extract_strided_slice %11 {offsets = [0, 128], sizes = [16, 32], strides = [1, 1]} : vector<16x256xf32> to vector<16x32xf32>
    %22 = arith.maximumf %20, %21 : vector<16x32xf32>
    %23 = vector.extract_strided_slice %11 {offsets = [0, 160], sizes = [16, 32], strides = [1, 1]} : vector<16x256xf32> to vector<16x32xf32>
    %24 = arith.maximumf %22, %23 : vector<16x32xf32>
    %25 = vector.extract_strided_slice %11 {offsets = [0, 192], sizes = [16, 32], strides = [1, 1]} : vector<16x256xf32> to vector<16x32xf32>
    %26 = arith.maximumf %24, %25 : vector<16x32xf32>
    %27 = vector.extract_strided_slice %11 {offsets = [0, 224], sizes = [16, 32], strides = [1, 1]} : vector<16x256xf32> to vector<16x32xf32>
    %28 = arith.maximumf %26, %27 : vector<16x32xf32>
    %cst_12 = arith.constant 0.000000e+00 : f32
    %29 = vector.broadcast %cst_12 : f32 to vector<16x32xf32>
    %cst_13 = arith.constant 0.000000e+00 : f32
    %30 = vector.broadcast %cst_13 : f32 to vector<16x32xf32>
    %31 = vector.extract_strided_slice %11 {offsets = [0, 0], sizes = [16, 32], strides = [1, 1]} : vector<16x256xf32> to vector<16x32xf32>
    %32 = arith.subf %31, %28 : vector<16x32xf32>
    %33 = math.exp %32 : vector<16x32xf32>
    %34 = arith.addf %29, %33 : vector<16x32xf32>
    %c0_i32_14 = arith.constant 0 : i32
    %35 = vector.broadcast %c0_i32_14 : i32 to vector<16x32xi32>
    %36 = arith.cmpi eq, %13, %35 : vector<16x32xi32>
    %cst_15 = arith.constant 0.000000e+00 : f32
    %37 = vector.broadcast %cst_15 : f32 to vector<16x32xf32>
    %38 = arith.select %36, %31, %37 : vector<16x32xi1>, vector<16x32xf32>
    %39 = arith.addf %30, %38 : vector<16x32xf32>
    %40 = vector.extract_strided_slice %11 {offsets = [0, 32], sizes = [16, 32], strides = [1, 1]} : vector<16x256xf32> to vector<16x32xf32>
    %41 = arith.subf %40, %28 : vector<16x32xf32>
    %42 = math.exp %41 : vector<16x32xf32>
    %43 = arith.addf %34, %42 : vector<16x32xf32>
    %c1_i32 = arith.constant 1 : i32
    %44 = vector.broadcast %c1_i32 : i32 to vector<16x32xi32>
    %45 = arith.cmpi eq, %13, %44 : vector<16x32xi32>
    %cst_16 = arith.constant 0.000000e+00 : f32
    %46 = vector.broadcast %cst_16 : f32 to vector<16x32xf32>
    %47 = arith.select %45, %40, %46 : vector<16x32xi1>, vector<16x32xf32>
    %48 = arith.addf %39, %47 : vector<16x32xf32>
    %49 = vector.extract_strided_slice %11 {offsets = [0, 64], sizes = [16, 32], strides = [1, 1]} : vector<16x256xf32> to vector<16x32xf32>
    %50 = arith.subf %49, %28 : vector<16x32xf32>
    %51 = math.exp %50 : vector<16x32xf32>
    %52 = arith.addf %43, %51 : vector<16x32xf32>
    %c2_i32 = arith.constant 2 : i32
    %53 = vector.broadcast %c2_i32 : i32 to vector<16x32xi32>
    %54 = arith.cmpi eq, %13, %53 : vector<16x32xi32>
    %cst_17 = arith.constant 0.000000e+00 : f32
    %55 = vector.broadcast %cst_17 : f32 to vector<16x32xf32>
    %56 = arith.select %54, %49, %55 : vector<16x32xi1>, vector<16x32xf32>
    %57 = arith.addf %48, %56 : vector<16x32xf32>
    %58 = vector.extract_strided_slice %11 {offsets = [0, 96], sizes = [16, 32], strides = [1, 1]} : vector<16x256xf32> to vector<16x32xf32>
    %59 = arith.subf %58, %28 : vector<16x32xf32>
    %60 = math.exp %59 : vector<16x32xf32>
    %61 = arith.addf %52, %60 : vector<16x32xf32>
    %c3_i32 = arith.constant 3 : i32
    %62 = vector.broadcast %c3_i32 : i32 to vector<16x32xi32>
    %63 = arith.cmpi eq, %13, %62 : vector<16x32xi32>
    %cst_18 = arith.constant 0.000000e+00 : f32
    %64 = vector.broadcast %cst_18 : f32 to vector<16x32xf32>
    %65 = arith.select %63, %58, %64 : vector<16x32xi1>, vector<16x32xf32>
    %66 = arith.addf %57, %65 : vector<16x32xf32>
    %67 = vector.extract_strided_slice %11 {offsets = [0, 128], sizes = [16, 32], strides = [1, 1]} : vector<16x256xf32> to vector<16x32xf32>
    %68 = arith.subf %67, %28 : vector<16x32xf32>
    %69 = math.exp %68 : vector<16x32xf32>
    %70 = arith.addf %61, %69 : vector<16x32xf32>
    %c4_i32 = arith.constant 4 : i32
    %71 = vector.broadcast %c4_i32 : i32 to vector<16x32xi32>
    %72 = arith.cmpi eq, %13, %71 : vector<16x32xi32>
    %cst_19 = arith.constant 0.000000e+00 : f32
    %73 = vector.broadcast %cst_19 : f32 to vector<16x32xf32>
    %74 = arith.select %72, %67, %73 : vector<16x32xi1>, vector<16x32xf32>
    %75 = arith.addf %66, %74 : vector<16x32xf32>
    %76 = vector.extract_strided_slice %11 {offsets = [0, 160], sizes = [16, 32], strides = [1, 1]} : vector<16x256xf32> to vector<16x32xf32>
    %77 = arith.subf %76, %28 : vector<16x32xf32>
    %78 = math.exp %77 : vector<16x32xf32>
    %79 = arith.addf %70, %78 : vector<16x32xf32>
    %c5_i32 = arith.constant 5 : i32
    %80 = vector.broadcast %c5_i32 : i32 to vector<16x32xi32>
    %81 = arith.cmpi eq, %13, %80 : vector<16x32xi32>
    %cst_20 = arith.constant 0.000000e+00 : f32
    %82 = vector.broadcast %cst_20 : f32 to vector<16x32xf32>
    %83 = arith.select %81, %76, %82 : vector<16x32xi1>, vector<16x32xf32>
    %84 = arith.addf %75, %83 : vector<16x32xf32>
    %85 = vector.extract_strided_slice %11 {offsets = [0, 192], sizes = [16, 32], strides = [1, 1]} : vector<16x256xf32> to vector<16x32xf32>
    %86 = arith.subf %85, %28 : vector<16x32xf32>
    %87 = math.exp %86 : vector<16x32xf32>
    %88 = arith.addf %79, %87 : vector<16x32xf32>
    %c6_i32 = arith.constant 6 : i32
    %89 = vector.broadcast %c6_i32 : i32 to vector<16x32xi32>
    %90 = arith.cmpi eq, %13, %89 : vector<16x32xi32>
    %cst_21 = arith.constant 0.000000e+00 : f32
    %91 = vector.broadcast %cst_21 : f32 to vector<16x32xf32>
    %92 = arith.select %90, %85, %91 : vector<16x32xi1>, vector<16x32xf32>
    %93 = arith.addf %84, %92 : vector<16x32xf32>
    %94 = vector.extract_strided_slice %11 {offsets = [0, 224], sizes = [16, 32], strides = [1, 1]} : vector<16x256xf32> to vector<16x32xf32>
    %95 = arith.subf %94, %28 : vector<16x32xf32>
    %96 = math.exp %95 : vector<16x32xf32>
    %97 = arith.addf %88, %96 : vector<16x32xf32>
    %c7_i32 = arith.constant 7 : i32
    %98 = vector.broadcast %c7_i32 : i32 to vector<16x32xi32>
    %99 = arith.cmpi eq, %13, %98 : vector<16x32xi32>
    %cst_22 = arith.constant 0.000000e+00 : f32
    %100 = vector.broadcast %cst_22 : f32 to vector<16x32xf32>
    %101 = arith.select %99, %94, %100 : vector<16x32xi1>, vector<16x32xf32>
    %102 = arith.addf %93, %101 : vector<16x32xf32>
    %103 = math.log %97 : vector<16x32xf32>
    %104 = arith.addf %28, %103 : vector<16x32xf32>
    %c255_i32 = arith.constant 255 : i32
    %105 = vector.broadcast %c255_i32 : i32 to vector<16x32xi32>
    %106 = arith.cmpi ne, %13, %105 : vector<16x32xi32>
    %107 = arith.subf %104, %102 : vector<16x32xf32>
    %cst_23 = arith.constant 0.000000e+00 : f32
    %108 = vector.broadcast %cst_23 : f32 to vector<16x32xf32>
    %109 = arith.select %106, %107, %108 : vector<16x32xi1>, vector<16x32xf32>
    %c0_24 = arith.constant 0 : index
    %c0_25 = arith.constant 0 : index
    %c0_26 = arith.constant 0 : index
    %c0_27 = arith.constant 0 : index
    %110 = vector.load %arg8[%c0_24, %c0_25, %c0_26, %c0_27] : memref<1x1x8x32xf32, #tpu.memory_space<vmem>>, vector<1x1x8x32xf32>
    %111 = vector.shape_cast %110 : vector<1x1x8x32xf32> to vector<8x32xf32>
    %112 = vector.extract_strided_slice %109 {offsets = [0, 0], sizes = [8, 32], strides = [1, 1]} : vector<16x32xf32> to vector<8x32xf32>
    %113 = vector.extract_strided_slice %109 {offsets = [8, 0], sizes = [8, 32], strides = [1, 1]} : vector<16x32xf32> to vector<8x32xf32>
    %114 = arith.addf %112, %113 : vector<8x32xf32>
    %115 = arith.addf %111, %114 : vector<8x32xf32>
    %c0_28 = arith.constant 0 : index
    %c0_29 = arith.constant 0 : index
    %c0_30 = arith.constant 0 : index
    %c0_31 = arith.constant 0 : index
    %116 = vector.load %arg8[%c0_28, %c0_29, %c0_30, %c0_31] : memref<1x1x8x32xf32, #tpu.memory_space<vmem>>, vector<1x1x8x32xf32>
    %117 = vector.shape_cast %116 : vector<1x1x8x32xf32> to vector<8x32xf32>
    %118 = vector.shape_cast %115 : vector<8x32xf32> to vector<1x1x8x32xf32>
    tpu.vector_store %arg8[%c0_28, %c0_29, %c0_30, %c0_31], %118 {strides = array<i32>} : memref<1x1x8x32xf32, #tpu.memory_space<vmem>>, vector<1x1x8x32xf32>,
    %c0_32 = arith.constant 0 : index
    %c0_33 = arith.constant 0 : index
    %c0_34 = arith.constant 0 : index
    %c0_35 = arith.constant 0 : index
    %119 = vector.load %arg9[%c0_32, %c0_33, %c0_34, %c0_35] : memref<1x1x8x32xf32, #tpu.memory_space<vmem>>, vector<1x1x8x32xf32>
    %120 = vector.shape_cast %119 : vector<1x1x8x32xf32> to vector<8x32xf32>
    %121 = arith.extui %106 : vector<16x32xi1> to vector<16x32xi32>
    %122 = arith.sitofp %121 : vector<16x32xi32> to vector<16x32xf32>
    %123 = vector.extract_strided_slice %122 {offsets = [0, 0], sizes = [8, 32], strides = [1, 1]} : vector<16x32xf32> to vector<8x32xf32>
    %124 = vector.extract_strided_slice %122 {offsets = [8, 0], sizes = [8, 32], strides = [1, 1]} : vector<16x32xf32> to vector<8x32xf32>
    %125 = arith.addf %123, %124 : vector<8x32xf32>
    %126 = arith.addf %120, %125 : vector<8x32xf32>
    %c0_36 = arith.constant 0 : index
    %c0_37 = arith.constant 0 : index
    %c0_38 = arith.constant 0 : index
    %c0_39 = arith.constant 0 : index
    %127 = vector.load %arg9[%c0_36, %c0_37, %c0_38, %c0_39] : memref<1x1x8x32xf32, #tpu.memory_space<vmem>>, vector<1x1x8x32xf32>
    %128 = vector.shape_cast %127 : vector<1x1x8x32xf32> to vector<8x32xf32>
    %129 = vector.shape_cast %126 : vector<8x32xf32> to vector<1x1x8x32xf32>
    tpu.vector_store %arg9[%c0_36, %c0_37, %c0_38, %c0_39], %129 {strides = array<i32>} : memref<1x1x8x32xf32, #tpu.memory_space<vmem>>, vector<1x1x8x32xf32>,
    return
  }
  func.func @transform_0(%arg0: i32, %arg1: i32, %arg2: i32, %arg3: i32) -> (i32, i32, i32, i32, i32) {
    %c0_i32 = arith.constant 0 : i32
    %c0_i32_0 = arith.constant 0 : i32
    %c0_i32_1 = arith.constant 0 : i32
    %c0_i32_2 = arith.constant 0 : i32
    return %arg0, %arg1, %c0_i32, %c0_i32_0, %c0_i32_1 : i32, i32, i32, i32, i32
  }
  func.func @transform_1(%arg0: i32, %arg1: i32, %arg2: i32, %arg3: i32) -> (i32, i32, i32, i32) {
    %c0_i32 = arith.constant 0 : i32
    %c0_i32_0 = arith.constant 0 : i32
    return %arg1, %arg2, %arg3, %c0_i32 : i32, i32, i32, i32
  }
  func.func @transform_2(%arg0: i32, %arg1: i32, %arg2: i32, %arg3: i32) -> (i32, i32) {
    %c0_i32 = arith.constant 0 : i32
    %c0_i32_0 = arith.constant 0 : i32
    return %arg3, %c0_i32 : i32, i32
  }
  func.func @transform_3(%arg0: i32, %arg1: i32, %arg2: i32, %arg3: i32) -> (i32, i32) {
    %c0_i32 = arith.constant 0 : i32
    %c0_i32_0 = arith.constant 0 : i32
    return %c0_i32, %arg2 : i32, i32
  }
  func.func @transform_4(%arg0: i32, %arg1: i32, %arg2: i32, %arg3: i32) -> (i32, i32, i32, i32) {
    %c0_i32 = arith.constant 0 : i32
    %c0_i32_0 = arith.constant 0 : i32
    %c0_i32_1 = arith.constant 0 : i32
    return %arg0, %arg1, %c0_i32, %c0_i32_0 : i32, i32, i32, i32
  }
  func.func @transform_5(%arg0: i32, %arg1: i32, %arg2: i32, %arg3: i32) -> (i32, i32, i32, i32) {
    %c0_i32 = arith.constant 0 : i32
    %c0_i32_0 = arith.constant 0 : i32
    %c0_i32_1 = arith.constant 0 : i32
    return %arg0, %arg1, %c0_i32, %c0_i32_0 : i32, i32, i32, i32
  }
}

</mosaic_0001>

<bundles_post_ra>
// kernel: tpu_custom_call.1
= control target key start
LH: loop header
LB: loop body
LE: loop exit
PB: predicated region body
PF: predicated region fallthrough
CT: control target
= control target key end

     0   :  { %s2518_s0 = inlined_call_operand.hbm [shape: bf16[2,2,8,8,8], index: 0, kind: input, shape index: {}]   ;;  %s2519_s1 = inlined_call_operand.hbm [shape: s32[2,1,32,32], index: 1, kind: input, shape index: {}]   ;;  %s2520_s2 = inlined_call_operand.vmem [shape: bf16[32,8], index: 2, kind: input, shape index: {}]   ;;  %s2521_s3 = inlined_call_operand.vmem [shape: bf16[8,32], index: 3, kind: input, shape index: {}]   ;;  %s2522_s4 = inlined_call_operand.hbm [shape: f32[2,2,8,32], index: 4, kind: output, shape index: {0}]   ;;  %s2523_s5 = inlined_call_operand.hbm [shape: f32[2,2,8,32], index: 5, kind: output, shape index: {1}]  }
   0x1   :  { %2539 = sst [smem:[#allocation24_spill]] %s2518_s0 }
   0x2   :  { %2540 = sst [smem:[#allocation25_spill]] %s2520_s2 }
   0x3   :  { %2541 = sst [smem:[#allocation26_spill]] %s2521_s3 }
   0x4   :  { %2542 = sst [smem:[#allocation27_spill]] %s2522_s4 }
   0x5   :  { %2543 = sst [smem:[#allocation28_spill]] %s2523_s5 }
   0x6   :  { %11 = vsyncpa [#allocation4], 0 }
   0x7   :  { %13 = vsyncpa [#allocation4 + $0x1], 0 }
   0x8   :  { %14 = vsyncpa [#allocation7], 0 }
   0x9   :  { %16 = vsyncpa [#allocation7 + $0x1], 0 }
   0xa   :  { %17 = vsyncpa [#allocation5], 0 }
   0xb   :  { %19 = vsyncpa [#allocation5 + $0x1], 0 }
   0xc   :  { %20 = vsyncpa [#allocation10], 0 }
   0xd   :  { %22 = vsyncpa [#allocation10 + $0x1], 0  ;;  %s1954_s18 = smov 0   ;;  %s1956_s19 = smov 0  }
   0xe   :  { %s1958_s20 = smov 0   ;;  %s1960_s21 = smov 0  }
   0xf   :  { %s1962_s22 = smov 0   ;;  %s1964_s23 = smov 0  }
  0x10   :  { %s1966_s24 = smov 0   ;;  %s1968_s25 = smov 0  }
  0x11   :  { %s1970_s26 = smov 0   ;;  %s1972_s27 = smov 0  }
  0x12   :  { %s1974_s28 = smov 0   ;;  %s1976_s29 = smov 0  }
  0x13   :  { %s1978_s30 = smov 0  }
  0x14 LB: > { %2544 = sst [smem:[#allocation15_spill]] %s1867_s21  ;;  %s1358_s6 = sadd.s32 4294967295, %s1903_s30   ;;  %s1903_s30 = sphi %s1978_s30, %s28_s30   ;;  %s1899_s29 = sphi %s1976_s29, %s2597_s29   ;;  %s1895_s28 = sphi %s1974_s28, %s2596_s28   ;;  %s1891_s27 = sphi %s1972_s27, %s2586_s27   ;;  %s1887_s26 = sphi %s1970_s26, %s2595_s26   ;;  %s1883_s25 = sphi %s1968_s25, %s2594_s25   ;;  %s1879_s24 = sphi %s1966_s24, %s2585_s24   ;;  %s1875_s23 = sphi %s1964_s23, %s2593_s23   ;;  %s1871_s22 = sphi %s1962_s22, %s2592_s22   ;;  %s1867_s21 = sphi %s1960_s21, %s2591_s21   ;;  %s1863_s20 = sphi %s1958_s20, %s2590_s20   ;;  %s1859_s19 = sphi %s1956_s19, %s2589_s19   ;;  %s1855_s18 = sphi %s1954_s18, %s2588_s18  }
  0x15   : > { %2545 = sst [smem:[#allocation16_spill]] %s1879_s24  ;;  %s1359_s7 = sadd.s32 4294967294, %s1903_s30  }
  0x16   : > { %2546 = sst [smem:[#allocation17_spill]] %s1883_s25  ;;  %p70_p0 = scmp.ne.s32.totalorder %s1875_s23, %s1871_s22 }
  0x17   : > { %2547 = sst [smem:[#allocation18_spill]] %s1887_s26  ;;  %p2529_p1 = scmp.eq.s32.totalorder %s1903_s30, 0 }
  0x18   : > { %2548 = sst [smem:[#allocation19_spill]] %s1891_s27  ;;  %p76_p2 = scmp.ne.s32.totalorder %s1871_s22, %s1867_s21 }
  0x19   : > { %p2028_p3 = scmp.eq.s32.totalorder %s1358_s6, 0  ;;  %p2034_p4 = por %p2529_p1, %p70_p0 }
  0x1a   : > { %p184_p5 = scmp.eq.s32.totalorder %s1358_s6, 7  ;;  %p190_p7 = scmp.eq.s32.totalorder %s1359_s7, 7 }
  0x1b   : > { %p2040_p6 = por %p2028_p3, %p76_p2  ;;  %p2528_p10 = scmp.lt.s32.totalorder %s1903_s30, 8 }
  0x1c   : > { %p2044_p8 = por %p184_p5, %p70_p0  ;;  %p2048_p9 = por %p190_p7, %p76_p2 }
  0x1d   : > { %s2551_s12 = scalar_select %p2040_p6, 1, 0 }
  0x1e   : > { %s2552_s13 = scalar_select %p2044_p8, 1, 0 }
  0x1f   : > { %s2554_s14 = scalar_select %p2048_p9, 1, 0 }
  0x20   : > { %2553 = sst [smem:[#allocation20_spill]] %s2552_s13  ;;  %s245_s15 = sand.u32 1, %s1875_s23  }
  0x21   : > { %2555 = sst [smem:[#allocation21_spill]] %s2554_s14  ;;  %s1364_s16 = sshll.u32 %s1895_s28, 3 }
  0x22   : > { %s1363_s17 = sshll.u32 %s245_s15, 5  ;;  %s1365_s6 = sshll.u32 %s1899_s29, 4 }
  0x23   : > { %s255_s9 = sadd.s32 %s1365_s6, %s1364_s16  ;;  %s249_s8 = scalar_lea.vmem [#allocation3], %s1363_s17 }
  0x24   : > { %s258_s21 = sshll.u32 %s249_s8, 4  ;;  %s1366_s4 = sshll.u32 %s255_s9, 6  ;;  %s2056_s21 = int_to_ptr.vmem [resolvable:$true] %s258_s21 }
  0x25   : > { %s2556_s0 = sld [smem:[#allocation24_spill]]  ;;  %p2067_p11 = pnand %p2528_p10, %p2034_p4 }
  0x26   : > { %s2072_s8 = scalar_lea.sflag [#allocation4], %s245_s15 }
  0x27   : > { %p1671_p0 = pneg %p2067_p11 }
  0x2b   : > { %s2061_s25 = scalar_lea.hbm %s2556_s0, %s1366_s4  ;;  %s1674_s11 = scalar_lea.hbm %s2556_s0, 2048 }
  0x2c   : > { %s1669_s9 = scalar_lea.hbm %s2061_s25, 512  ;;  %p1675_p4 = scmp.lt.u32.totalorder %s2061_s25, %s2556_s0 }
  0x2d   : > { %p1670_p13 = scmp.ne.s32.totalorder %s2061_s25, %s1669_s9  ;;  %p1676_p7 = scmp.lt.u32.totalorder %s1674_s11, %s1669_s9 }
  0x2e   : > { %p1678_p1 = scmp.lt.u32.totalorder %s1669_s9, %s2061_s25 }
  0x2f   : > { %p1672_p2 = pnand %p1671_p0, %p1670_p13  ;;  %p1677_p10 = por %p1676_p7, %p1675_p4 }
  0x31   : > { %p1673_p5 = pneg %p1672_p2  ;;  %p1679_p12 = por %p1678_p1, %p1677_p10 }
  0x33   : > { %p1680_p9 = pnand %p1679_p12, %p1673_p5 }
  0x35   : > { %1683 = shalt.err (!%p1680_p9)
}
  0x36   : > { %s1684_s15 = scalar_lea.vmem %s2056_s21, 512  ;;  %s1905_s6 = smov [#allocation3]  }
  0x37   : > { %p1685_p13 = scmp.ne.s32.totalorder %s2056_s21, %s1684_s15  ;;  %s1689_s7 = sshll.u32 %s1905_s6, 4  ;;  %s1690_s7 = int_to_ptr.vmem [resolvable:$false] %s1689_s7 }
  0x38   : > { %s1691_s4 = scalar_lea.vmem %s1690_s7, 1024  ;;  %p1692_p6 = scmp.lt.s32.totalorder %s2056_s21, %s1690_s7 }
  0x39   : > { %p1687_p2 = pnand %p1685_p13, %p1671_p0  ;;  %p1693_p4 = scmp.lt.s32.totalorder %s1691_s4, %s1684_s15 }
  0x3b   : > { %p1688_p8 = pneg %p1687_p2  ;;  %p1694_p7 = por %p1693_p4, %p1692_p6 }
  0x3d   : > { %p1695_p1 = pnand %p1694_p7, %p1688_p8 }
  0x3f   : > { %1698 = shalt.err (!%p1695_p1)
}
  0x40   : > { %s1906_s9 = smov 64   ;;  %s1907_s5 = smov 4  }
  0x41   : > { %1498 = dma.hbm_to_vmem [thread:$0]  (!%p2067_p11), %s2061_s25, 512, %s2056_s21, %s2072_s8, %s1906_s9, %s1906_s9, %s1907_s5  }
  0x42   : > { %p300_p6 = scmp.lt.s32.totalorder %s1903_s30, 9  ;;  %p2558_p8 = scmp.ge.s32.totalorder %s1903_s30, 1 }
  0x43   : > { %s43_s16 = sadd.s32 1, %s1891_s27  ;;  %s50_s17 = sadd.s32 1, %s1895_s28 }
  0x44   : > { %p2103_p9 = pnand %p2558_p8, %p300_p6  ;;  %p44_p10 = scmp.ge.s32.totalorder %s43_s16, 2 }
  0x45   : > { %s93_s15 = sadd.s32 1, %s1863_s20  ;;  %p100_p12 = scmp.ne.s32.totalorder %s1863_s20, %s1859_s19 }
  0x46   : > { %p106_p0 = scmp.ne.s32.totalorder %s1859_s19, %s1855_s18  ;;  %s2599_s16 = smov (%p44_p10, %s43_s16), 0 }
  0x47   : > { %2560 = sst [smem:[#allocation22_spill]] %s2599_s16  ;;  %s2601_s17 = smov (!%p44_p10, %s50_s17), %s1895_s28 }
  0x48   : > { %s89_s21 = ssub.s32 %s1891_s27, %s2599_s16  ;;  %p2561_p11 = scmp.eq.s32.totalorder %s1903_s30, 0 }
  0x49   : > { %p52_p13 = scmp.ge.s32.totalorder %s2601_s17, 2  ;;  %p2127_p2 = por %p106_p0, %p2028_p3 }
  0x4a   : > { %p2121_p5 = por %p100_p12, %p2561_p11  ;;  %s268_s18 = sand.u32 1, %s1863_s20  }
  0x4b   : > { %s2563_s14 = scalar_select %p2127_p2, 1, 0 }
  0x4c   : > { %s1368_s8 = sshll.u32 %s1891_s27, 1  ;;  %s2603_s17 = smov (%p52_p13, %s2601_s17), 0 }
  0x4d   : > { %2564 = sst [smem:[#allocation23_spill]] %s2603_s17  ;;  %s2565_s6 = sadd.s32 1, %s1899_s29 }
  0x4e   : > { %s2605_s6 = smov (!%p52_p13, %s2565_s6), %s1899_s29  ;;  %s59_s7 = ssub.s32 %s1895_s28, %s2603_s17 }
  0x4f   : > { %p56_p4 = scmp.ge.s32.totalorder %s2605_s6, 2  ;;  %s90_s4 = sor.u32 %s89_s21, %s59_s7 }
  0x50   : > { %p91_p7 = scmp.eq.s32.totalorder %s90_s4, 0  ;;  %s1367_s10 = sshll.u32 %s268_s18, 4 }
  0x51   : > { %s2607_s6 = smov (%p56_p4, %s2605_s6), 0  ;;  %s1369_s16 = sshll.u32 %s1895_s28, 2 }
  0x52   : > { %s2143_s9 = scalar_select %p91_p7, %s1863_s20, %s93_s15  }
  0x53   : > { %s58_s5 = ssub.s32 %s1899_s29, %s2607_s6  ;;  %s280_s27 = sadd.s32 %s1369_s16, %s1368_s8 }
  0x54   : > { %s60_s0 = sor.u32 %s59_s7, %s58_s5  ;;  %s1370_s13 = sshll.u32 %s280_s27, 7 }
  0x55   : > { %p61_p3 = scmp.eq.s32.totalorder %s60_s0, 0  ;;  %s272_s26 = scalar_lea.vmem [#allocation6], %s1367_s10 }
  0x56   : > { %s283_s3 = sshll.u32 %s272_s26, 4  ;;  %s2566_s17 = sadd.s32 1, %s1875_s23  ;;  %s2158_s3 = int_to_ptr.vmem [resolvable:$true] %s283_s3 }
  0x57   : > { %s2151_s2 = scalar_select %p61_p3, %s1875_s23, %s2566_s17  }
  0x58   : > { %s2156_s4 = scalar_lea.hbm %s2519_s1, %s1370_s13  ;;  %p2567_p1 = scmp.lt.s32.totalorder %s1903_s30, 8 }
  0x59   : > { %s2168_s26 = scalar_lea.sflag [#allocation7], %s268_s18  ;;  %s1699_s27 = scalar_lea.hbm %s2156_s4, 256 }
  0x5a   : > { %p2164_p6 = pnand %p2567_p1, %p2121_p5  ;;  %p1700_p8 = scmp.ne.s32.totalorder %s2156_s4, %s1699_s27 }
  0x5b   : > { %s1704_s16 = scalar_lea.hbm %s2519_s1, 1024  ;;  %p1705_p11 = scmp.lt.u32.totalorder %s2156_s4, %s2519_s1 }
  0x5c   : > { %p1701_p10 = pneg %p2164_p6  ;;  %p1706_p5 = scmp.lt.u32.totalorder %s1704_s16, %s1699_s27 }
  0x5d   : > { %p1708_p4 = scmp.lt.u32.totalorder %s1699_s27, %s2156_s4 }
  0x5e   : > { %p1702_p12 = pnand %p1701_p10, %p1700_p8  ;;  %p1707_p13 = por %p1706_p5, %p1705_p11 }
  0x60   : > { %p1703_p0 = pneg %p1702_p12  ;;  %p1709_p7 = por %p1708_p4, %p1707_p13 }
  0x62   : > { %p1710_p3 = pnand %p1709_p7, %p1703_p0 }
  0x64   : > { %1713 = shalt.err (!%p1710_p3)
}
  0x65   : > { %s1714_s25 = scalar_lea.vmem %s2158_s3, 256  ;;  %s1908_s18 = smov [#allocation6]  }
  0x66   : > { %p1715_p1 = scmp.ne.s32.totalorder %s2158_s3, %s1714_s25  ;;  %s1719_s8 = sshll.u32 %s1908_s18, 4  ;;  %s1720_s8 = int_to_ptr.vmem [resolvable:$false] %s1719_s8 }
  0x67   : > { %s1721_s7 = scalar_lea.vmem %s1720_s8, 512  ;;  %p1722_p2 = scmp.lt.s32.totalorder %s2158_s3, %s1720_s8 }
  0x68   : > { %p1717_p8 = pnand %p1715_p1, %p1701_p10  ;;  %p1723_p11 = scmp.lt.s32.totalorder %s1721_s7, %s1714_s25 }
  0x6a   : > { %p1718_p12 = pneg %p1717_p8  ;;  %p1724_p5 = por %p1723_p11, %p1722_p2 }
  0x6c   : > { %p1725_p13 = pnand %p1724_p5, %p1718_p12 }
  0x6e   : > { %1728 = shalt.err (!%p1725_p13)
}
  0x6f   : > { %s1909_s10 = smov 128   ;;  %s1910_s5 = smov 8  }
  0x70   : > { %1501 = dma.hbm_to_vmem [thread:$0]  (!%p2164_p6), %s2156_s4, 256, %s2158_s3, %s2168_s26, %s1909_s10, %s1909_s10, %s1910_s5  }
  0x71   : > { %304 = sbr.rel (%p2103_p9) target bundleno = 1182 (0x49e), region = 36  ;;  %s2199_s21 = sand.u32 (!%p2103_p9), 1, %s1871_s22  }
  0x72   : > { %s1372_s27 = sshll.u32 (!%p2103_p9), %s2199_s21, 5  ;;  %s307_s24 = scalar_lea.sflag (!%p2103_p9), [#allocation4], %s2199_s21 }
  0x73   : > { %s2203_s13 = scalar_lea.vmem (!%p2103_p9), [#allocation3], %s1372_s27  ;;  %p2569_p2 = scmp.ne.s32.totalorder (!%p2103_p9), %s2551_s12, 0 }
  0x78   : > { %1838 = dma.done.wait (%p2569_p2), %s307_s24, 512  }
  0x79   : > { %1840 = vsyncadd (%p2569_p2), %s307_s24, 4294966784  ;;  %s315_s3 = sand.u32 1, %s1859_s19   ;;  %p2570_p9 = scmp.ne.s32.totalorder %s2563_s14, 0 }
  0x7a   : > { %s2210_s11 = sshll.u32 %s315_s3, 4  ;;  %s316_s4 = scalar_lea.sflag [#allocation7], %s315_s3 }
  0x7b   : > { %s319_s0 = scalar_lea.vmem [#allocation6], %s2210_s11 }
  0x7c   : > { %1842 = dma.done.wait (%p2570_p9), %s316_s4, 256  }
  0x7d   : > { %1844 = vsyncadd (%p2570_p9), %s316_s4, 4294967040  ;;  %s2571_s26 = sld [smem:[#allocation16_spill]]  ;;  %s1374_s16 = sshll.u32 %s2199_s21, 3 }
  0x7e   : > { %s2572_s18 = sld [smem:[#allocation25_spill]]  ;;  %s2225_s7 = scalar_lea.vmem [#allocation8], %s1374_s16 }
  0x7f   : > { %s2227_s10 = scalar_lea.vmem [#allocation9], %s1374_s16 }
  0x83   : > { %s1376_s17 = sshll.u32 %s2571_s26, 1  ;;  %p378_p10 = scmp.eq.s32.totalorder %s2571_s26, 0 }
  0x84   : > { %p367_p6 = scmp.lt.s32.totalorder %s1376_s17, 3  ;;  %vm383_vm0 = vcmask (%p378_p10), 261120   ;;  %v1911_v0 = vmov (%p378_p10), 0.0  }
  0x85   : > { %382 = sbr.rel (!%p378_p10) target bundleno = 140 (0x8c), region = 48  ;;  %384 = vst.msk [vmem:[%s2225_s7] sm:$0xff] (%p378_p10), %vm383_vm0, %v1911_v0  ;;  %385 = vst.msk [vmem:[%s2227_s10] sm:$0xff] (%p378_p10), %vm383_vm0, %v1911_v0 }
  0x86   : > { %s2609_s17 = smov (!%p367_p6, %s1376_s17), 3 }
  0x87   : > { %s1377_s12 = sshll.u32 %s2609_s17, 2 }
  0x88   : > { %s2223_s8 = scalar_lea.vmem %s2572_s18, %s1377_s12 }
  0x8c PF: > { %s2573_s14 = sld [smem:[#allocation16_spill]] }
  0x92   : > { %p1379_p0 = scmp.ne.s32.totalorder %s2573_s14, 0 }
  0x93   : > { %s2574_s24 = sld [smem:[#allocation26_spill]] (!%p1379_p0)  ;;  %vm395_vm1 = vcmask (!%p1379_p0), 1043456   ;;  %v1912_v2 = vmov (!%p1379_p0), 0.0   ;;  %v390_v4 = vld [vmem:[%s2203_s13] sm:$0xf] (!%p1379_p0)  ;;  %vm391_vm2 = vcmask (!%p1379_p0), 64512  }
  0x94   : > { %388 = sbr.rel (%p1379_p0) target bundleno = 516 (0x204), region = 52  ;;  %1439 = vmatprep.subr.bf16.mxu0 (!%p1379_p0), %v1912_v2  ;;  %1445 = vmatprep.subr.bf16.mxu1 (!%p1379_p0), %v1912_v2  ;;  %v1381_v5 = vld [vmem:[%s2203_s13 + $0x4] sm:$0xf] (!%p1379_p0)  ;;  %vm1913_vm3 = vmmov (!%p1379_p0), 0   ;;  %v1384_v6 = vld [vmem:[%s2203_s13 + $0x8] sm:$0xf] (!%p1379_p0) }
  0x95   : > { %1441 = vmatprep.mubr.msk.bf16.mxu0 (!%p1379_p0), %vm1913_vm3, %v1912_v2  ;;  %1447 = vmatprep.mubr.msk.bf16.mxu1 (!%p1379_p0), %vm1913_vm3, %v1912_v2  ;;  %v1387_v7 = vld [vmem:[%s2203_s13 + $0xc] sm:$0xf] (!%p1379_p0)  ;;  %v1390_v8 = vld [vmem:[%s2203_s13 + $0x10] sm:$0xf] (!%p1379_p0)  ;;  %v1392_v9 = vld [vmem:[%s2203_s13 + $0x14] sm:$0xf] (!%p1379_p0) }
  0x96   : > { %v1395_v10 = vld [vmem:[%s2203_s13 + $0x18] sm:$0xf] (!%p1379_p0)  ;;  %v1398_v11 = vld [vmem:[%s2203_s13 + $0x1c] sm:$0xf] (!%p1379_p0)  ;;  %vm440_vm4 = vcmask (!%p1379_p0), 257024   ;;  %s1914_s3 = smov (!%p1379_p0), 32  }
  0x97   : > { %s1915_s13 = smov (!%p1379_p0), 64   ;;  %s1916_s4 = smov (!%p1379_p0), 96   ;;  %vm494_vm5 = vcmask (!%p1379_p0), 519424   ;;  %vm548_vm6 = vcmask (!%p1379_p0), 781824   ;;  %vm602_vm7 = vcmask (!%p1379_p0), 1044224  }
  0x99   : > { %v389_v1 = vld [vmem:[%s2574_s24] sm:$0xf] (!%p1379_p0) }
  0x9a   : > { %v397_v3 = vsel (!%p1379_p0), %vm395_vm1, %v389_v1, 0 }
  0x9b   : > { %1440 = vmatpush3.bf16.msra.mxu0 %v397_v3  ;;  %1446 = vmatpush3.bf16.msra.mxu1 %v397_v3 }
  0x9c   : > { %1451 = vmatprep.subr.bf16.mxu0 %v1912_v2  ;;  %1457 = vmatprep.subr.bf16.mxu1 %v1912_v2 }
  0x9e   : > { %1442 = vmatmul.mubr.msk.bf16.vlgmr.msra.gmra.mrb[0].mxu0 %vm391_vm2, %v390_v4  ;;  %1448 = vmatmul.mubr.msk.bf16.vlgmr.msra.gmra.mrb[0].mxu1 %vm391_vm2, %v1381_v5 }
  0x9f   : > { %1452 = vmatpush3.bf16.msra.mxu0 %v397_v3  ;;  %1458 = vmatpush3.bf16.msra.mxu1 %v397_v3 }
  0xa0   : > { %1453 = vmatprep.mubr.msk.bf16.mxu0 %vm1913_vm3, %v1912_v2  ;;  %1459 = vmatprep.mubr.msk.bf16.mxu1 %vm1913_vm3, %v1912_v2 }
  0xa1   : > { %1463 = vmatprep.subr.bf16.mxu0 %v1912_v2  ;;  %1469 = vmatprep.subr.bf16.mxu1 %v1912_v2 }
  0xa6   : > { %1454 = vmatmul.mubr.msk.bf16.vlgmr.msra.gmra.mrb[4].mxu0 %vm391_vm2, %v1384_v6  ;;  %1460 = vmatmul.mubr.msk.bf16.vlgmr.msra.gmra.mrb[4].mxu1 %vm391_vm2, %v1387_v7 }
  0xa7   : > { %1464 = vmatpush3.bf16.msra.mxu0 %v397_v3  ;;  %1470 = vmatpush3.bf16.msra.mxu1 %v397_v3 }
  0xa8   : > { %1465 = vmatprep.mubr.msk.bf16.mxu0 %vm1913_vm3, %v1912_v2  ;;  %1471 = vmatprep.mubr.msk.bf16.mxu1 %vm1913_vm3, %v1912_v2 }
  0xa9   : > { %1475 = vmatprep.subr.bf16.mxu0 %v1912_v2  ;;  %1481 = vmatprep.subr.bf16.mxu1 %v1912_v2 }
  0xae   : > { %1466 = vmatmul.mubr.msk.bf16.vlgmr.msra.gmra.mrb[8].mxu0 %vm391_vm2, %v1390_v8  ;;  %1472 = vmatmul.mubr.msk.bf16.vlgmr.msra.gmra.mrb[8].mxu1 %vm391_vm2, %v1392_v9 }
  0xaf   : > { %1476 = vmatpush3.bf16.msra.mxu0 %v397_v3  ;;  %1482 = vmatpush3.bf16.msra.mxu1 %v397_v3 }
  0xb0   : > { %1477 = vmatprep.mubr.msk.bf16.mxu0 %vm1913_vm3, %v1912_v2  ;;  %1483 = vmatprep.mubr.msk.bf16.mxu1 %vm1913_vm3, %v1912_v2 }
  0xb6   : > { %1478 = vmatmul.mubr.msk.bf16.vlgmr.msra.gmra.mrb[12].mxu0 %vm391_vm2, %v1395_v10  ;;  %1484 = vmatmul.mubr.msk.bf16.vlgmr.msra.gmra.mrb[12].mxu1 %vm391_vm2, %v1398_v11 }
 0x171   : > { %v433_v12 = vpop.f32.mrb[0].mxu0  ;;  %v481_v13 = vpop.f32.mrb[0].mxu1 }
 0x172   : > { %v439_v14 = vpack.c.bf16 %v433_v12, %v433_v12  ;;  %v1443_v15 = vpop.f32.mrb[1].mxu0  ;;  %v1417_v16 = vpack.c.bf16 %v481_v13, %v481_v13  ;;  %v1449_v17 = vpop.f32.mrb[1].mxu1 }
 0x173   : > { %v436_v18 = vpop.f32.mrb[2].mxu0  ;;  %v484_v19 = vpop.f32.mrb[2].mxu1 }
 0x174   : > { %441 = vst.msk [vmem:[#allocation2] sm:$0xf] %vm440_vm4, %v439_v14  ;;  %v1444_v20 = vpop.f32.mrb[3].mxu0  ;;  %v1450_v21 = vpop.f32.mrb[3].mxu1  ;;  %491 = vrot.lane.b32.xlu0 %v1417_v16, %s1914_s3 }
 0x179   : > { %v535_v22 = vpop.f32.mrb[4].mxu0  ;;  %v589_v23 = vpop.f32.mrb[4].mxu1 }
 0x17a   : > { %v1418_v24 = vpack.c.bf16 %v535_v22, %v535_v22  ;;  %v1455_v25 = vpop.f32.mrb[5].mxu0  ;;  %v1461_v26 = vpop.f32.mrb[5].mxu1  ;;  %v1419_v41 = vpack.c.bf16 %v589_v23, %v589_v23 }
 0x17b   : > { %v538_v27 = vpop.f32.mrb[6].mxu0  ;;  %v592_v28 = vpop.f32.mrb[6].mxu1 }
 0x17c   : > { %v1456_v29 = vpop.f32.mrb[7].mxu0  ;;  %545 = vrot.lane.b32.xlu1 %v1418_v24, %s1915_s13  ;;  %v1462_v30 = vpop.f32.mrb[7].mxu1 }
 0x181   : > { %v643_v31 = vpop.f32.mrb[8].mxu0  ;;  %v690_v32 = vpop.f32.mrb[8].mxu1 }
 0x182   : > { %v649_v33 = vpack.c.bf16 %v643_v31, %v643_v31  ;;  %v1420_v34 = vpack.c.bf16 %v690_v32, %v690_v32  ;;  %v1467_v35 = vpop.f32.mrb[9].mxu0  ;;  %v1473_v36 = vpop.f32.mrb[9].mxu1 }
 0x183   : > { %v646_v37 = vpop.f32.mrb[10].mxu0  ;;  %v693_v38 = vpop.f32.mrb[10].mxu1 }
 0x184   : > { %650 = vst.msk [vmem:[#allocation2 + $0x4] sm:$0xf] %vm440_vm4, %v649_v33  ;;  %700 = vrot.lane.b32.xlu0 %v1420_v34, %s1914_s3  ;;  %v1468_v39 = vpop.f32.mrb[11].mxu0  ;;  %v1474_v40 = vpop.f32.mrb[11].mxu1 }
 0x188   : > { %599 = vrot.lane.b32.xlu0 %v1419_v41, %s1916_s4 }
 0x189   : > { %v743_v42 = vpop.f32.mrb[12].mxu0  ;;  %v796_v43 = vpop.f32.mrb[12].mxu1 }
 0x18a   : > { %v1421_v44 = vpack.c.bf16 %v743_v42, %v743_v42  ;;  %v1479_v45 = vpop.f32.mrb[13].mxu0  ;;  %v1485_v46 = vpop.f32.mrb[13].mxu1  ;;  %v1422_v49 = vpack.c.bf16 %v796_v43, %v796_v43 }
 0x18b   : > { %v746_v47 = vpop.f32.mrb[14].mxu0  ;;  %v799_v48 = vpop.f32.mrb[14].mxu1 }
 0x18c   : > { %v1480_v50 = vpop.f32.mrb[15].mxu0  ;;  %753 = vrot.lane.b32.xlu1 %v1421_v44, %s1915_s13  ;;  %v1486_v51 = vpop.f32.mrb[15].mxu1 }
 0x190   : > { %806 = vrot.lane.b32.xlu1 %v1422_v49, %s1916_s4 }
 0x1e6   : > { %v492_v52 = vpop.permute.xlu0 %491 }
 0x1e7   : > { %495 = vst.msk [vmem:[#allocation2] sm:$0xf] %vm494_vm5, %v492_v52 }
 0x1ee   : > { %v546_v53 = vpop.permute.xlu1 %545 }
 0x1ef   : > { %549 = vst.msk [vmem:[#allocation2] sm:$0xf] %vm548_vm6, %v546_v53 }
 0x1f6   : > { %v701_v54 = vpop.permute.xlu0 %700 }
 0x1f7   : > { %703 = vst.msk [vmem:[#allocation2 + $0x4] sm:$0xf] %vm494_vm5, %v701_v54 }
 0x1fa   : > { %v600_v55 = vpop.permute.xlu0 %599 }
 0x1fb   : > { %603 = vst.msk [vmem:[#allocation2] sm:$0xf] %vm602_vm7, %v600_v55 }
 0x1fe   : > { %v754_v56 = vpop.permute.xlu1 %753 }
 0x1ff   : > { %756 = vst.msk [vmem:[#allocation2 + $0x4] sm:$0xf] %vm548_vm6, %v754_v56 }
 0x202   : > { %v807_v57 = vpop.permute.xlu1 %806 }
 0x203   : > { %809 = vst.msk [vmem:[#allocation2 + $0x4] sm:$0xf] %vm602_vm7, %v807_v57 }
 0x204 PF: > { %vm827_vm8 = vcmask 1043456   ;;  %v1917_v61 = vmov 0   ;;  %v1632_v63 = vld [vmem:[%s2223_s8] sm:$0xff]   ;;  %vm823_vm9 = vcmask 64512   ;;  %s1918_s26 = smov 64   ;;  %s1919_s16 = smov 96  }
 0x205   : > { %866 = vmatprep.mubr.bf16.mxu0 %v1917_v61  ;;  %s1920_s17 = smov 32   ;;  %v2296_v4 = vld [vmem:[%s319_s0] sm:$0xff]  ;;  %v2306_v13 = vld [vmem:[%s319_s0 + $0x8] sm:$0xff]  ;;  %s2575_s11 = sld [smem:[#allocation18_spill]] }
 0x206   : > { %vm941_vm10 = vcmp.eq.s32.totalorder %v2296_v4, 0  ;;  %vm971_vm11 = vcmp.eq.s32.totalorder %v2296_v4, 1  ;;  %vm999_vm12 = vcmp.eq.s32.totalorder %v2296_v4, 2  ;;  %vm1027_vm13 = vcmp.eq.s32.totalorder %v2296_v4, 3  ;;  %s2576_s0 = sld [smem:[#allocation17_spill]]  ;;  %s2577_s12 = sld [smem:[#allocation20_spill]] }
 0x207   : > { %vm1041_vm14 = vcmp.eq.s32.totalorder %v2296_v4, 4  ;;  %vm942_vm15 = vcmp.eq.s32.totalorder %v2306_v13, 0  ;;  %vm972_vm0 = vcmp.eq.s32.totalorder %v2306_v13, 1  ;;  %vm1000_vm1 = vcmp.eq.s32.totalorder %v2306_v13, 2  ;;  %s2578_s5 = sld [smem:[#allocation28_spill]]  ;;  %s1174_s24 = sshll.u32 %s2227_s10, 4  ;;  %s1175_s24 = int_to_ptr.vmem [resolvable:$true] %s1174_s24 }
 0x208   : > { %vm1028_vm2 = vcmp.eq.s32.totalorder %v2306_v13, 3  ;;  %vm1063_vm3 = vcmp.eq.s32.totalorder %v2296_v4, 5  ;;  %vm1042_vm4 = vcmp.eq.s32.totalorder %v2306_v13, 4  ;;  %vm1064_vm5 = vcmp.eq.s32.totalorder %v2306_v13, 5  ;;  %s1144_s3 = scalar_lea.sflag [#allocation10], %s2199_s21  ;;  %s1729_s13 = scalar_lea.vmem %s1175_s24, 128 }
 0x209   : > { %vm1085_vm6 = vcmp.eq.s32.totalorder %v2296_v4, 6  ;;  %vm1086_vm7 = vcmp.eq.s32.totalorder %v2306_v13, 6  ;;  %p1730_p4 = scmp.ne.s32.totalorder %s1175_s24, %s1729_s13  ;;  %s1922_s4 = smov [#allocation9]  }
 0x20a   : > { %v812_v58 = vld [vmem:[#allocation2] sm:$0xff] }
 0x20b   : > { %v1403_v59 = vcombine.high %v812_v58, %v812_v58  ;;  %v1402_v60 = vcombine.low %v812_v58, %v812_v58  ;;  %s1410_s15 = sshll.u32 %s2575_s11, 1 }
 0x20c   : > { %s2383_s25 = sadd.s32 %s2576_s0, %s1410_s15  ;;  %p2579_p7 = scmp.ne.s32.totalorder %s2577_s12, 0 }
 0x20d   : > { %1404 = vmatprep.subr.msk.bf16.mxu0 %vm827_vm8, %v1403_v59  ;;  %v829_v62 = vsel %vm827_vm8, %v1402_v60, 0  ;;  %vm1119_vm8 = vcmp.ne.s32.totalorder %v2296_v4, 255  ;;  %s1411_s18 = sshll.u32 %s2383_s25, 7 }
 0x20e   : > { %835 = vmatpush1.bf16.msra.mxu0 %v829_v62  ;;  %s2393_s27 = scalar_lea.hbm %s2578_s5, %s1411_s18  ;;  %p1731_p3 = pnand %p1730_p4, %p2579_p7 }
 0x210   : > { %p1732_p1 = pneg %p1731_p3 }
 0x211   : > { %1405 = vmatmul.mubr.msk.bf16.vlgmr.msra.gmra.mrb[0].mxu0 %vm823_vm9, %v1632_v63  ;;  %vm1120_vm9 = vcmp.ne.s32.totalorder %v2306_v13, 255 }
 0x2e4   : > { %v2262_v0 = vpop.f32.mrb[0].mxu0 }
 0x2e5   : > { %889 = vrot.lane.b32.xlu1 %v2262_v0, %s1918_s26  ;;  %881 = vrot.lane.b32.xlu0 %v2262_v0, %s1919_s16  ;;  %v2268_v1 = vpop.f32.mrb[1].mxu0  ;;  %v943_v8 = vsel %vm941_vm10, %v2262_v0, 0.0  ;;  %vm1128_vm10 = vcmask 261120  }
 0x2e6   : > { %v2270_v2 = vpop.f32.mrb[2].mxu0  ;;  %v1043_v21 = vsel %vm1041_vm14, %v2268_v1, 0.0 }
 0x2e7   : > { %v2272_v3 = vpop.f32.mrb[3].mxu0  ;;  %v944_v26 = vsel %vm942_vm15, %v2270_v2, 0.0 }
 0x2e8   : > { %v1044_v40 = vsel %vm1042_vm4, %v2272_v3, 0.0 }
 0x2e9   : > { %897 = vrot.lane.b32.xlu0 %v2262_v0, %s1920_s17  ;;  %891 = vrot.lane.b32.xlu1 %v2270_v2, %s1918_s26 }
 0x2ed   : > { %899 = vrot.lane.b32.xlu1 %v2270_v2, %s1920_s17  ;;  %883 = vrot.lane.b32.xlu0 %v2270_v2, %s1919_s16 }
 0x2f1   : > { %909 = vrot.lane.b32.xlu0 %v2268_v1, %s1919_s16  ;;  %911 = vrot.lane.b32.xlu1 %v2272_v3, %s1919_s16 }
 0x2f5   : > { %917 = vrot.lane.b32.xlu0 %v2268_v1, %s1918_s26  ;;  %919 = vrot.lane.b32.xlu1 %v2272_v3, %s1918_s26 }
 0x2f9   : > { %925 = vrot.lane.b32.xlu0 %v2268_v1, %s1920_s17  ;;  %927 = vrot.lane.b32.xlu1 %v2272_v3, %s1920_s17 }
 0x357   : > { %v890_v5 = vpop.permute.xlu1 %889  ;;  %v882_v6 = vpop.permute.xlu0 %881 }
 0x358   : > { %v887_v7 = vmax.f32 %v2262_v0, %v882_v6  ;;  %v973_v9 = vsel %vm971_vm11, %v882_v6, 0.0  ;;  %v1001_v11 = vsel %vm999_vm12, %v890_v5, 0.0 }
 0x359   : > { %v975_v10 = vadd.f32 %v973_v9, %v943_v8 }
 0x35a   : > { %v895_v12 = vmax.f32 %v887_v7, %v890_v5 }
 0x35b   : > { %v898_v14 = vpop.permute.xlu0 %897  ;;  %v1003_v15 = vadd.f32 %v1001_v11, %v975_v10  ;;  %v892_v16 = vpop.permute.xlu1 %891 }
 0x35c   : > { %v903_v17 = vmax.f32 %v895_v12, %v898_v14  ;;  %v1029_v18 = vsel %vm1027_vm13, %v898_v14, 0.0  ;;  %v1002_v29 = vsel %vm1000_vm1, %v892_v16, 0.0 }
 0x35d   : > { %v1031_v19 = vadd.f32 %v1029_v18, %v1003_v15 }
 0x35e   : > { %v905_v20 = vmax.f32 %v903_v17, %v2268_v1 }
 0x35f   : > { %v900_v22 = vpop.permute.xlu1 %899  ;;  %v884_v23 = vpop.permute.xlu0 %883  ;;  %v1045_v24 = vadd.f32 %v1043_v21, %v1031_v19 }
 0x360   : > { %v888_v25 = vmax.f32 %v2270_v2, %v884_v23  ;;  %v974_v27 = vsel %vm972_vm0, %v884_v23, 0.0  ;;  %v1030_v34 = vsel %vm1028_vm2, %v900_v22, 0.0 }
 0x361   : > { %v976_v28 = vadd.f32 %v974_v27, %v944_v26 }
 0x362   : > { %v896_v30 = vmax.f32 %v888_v25, %v892_v16 }
 0x363   : > { %v1004_v31 = vadd.f32 %v1002_v29, %v976_v28  ;;  %v910_v32 = vpop.permute.xlu0 %909  ;;  %v912_v33 = vpop.permute.xlu1 %911 }
 0x364   : > { %v1065_v35 = vsel %vm1063_vm3, %v910_v32, 0.0  ;;  %v904_v36 = vmax.f32 %v896_v30, %v900_v22  ;;  %v915_v44 = vmax.f32 %v905_v20, %v910_v32  ;;  %v1066_v46 = vsel %vm1064_vm5, %v912_v33, 0.0 }
 0x365   : > { %v1067_v37 = vadd.f32 %v1065_v35, %v1045_v24  ;;  %v1032_v38 = vadd.f32 %v1030_v34, %v1004_v31 }
 0x366   : > { %v906_v39 = vmax.f32 %v904_v36, %v2272_v3 }
 0x367   : > { %v1046_v41 = vadd.f32 %v1044_v40, %v1032_v38  ;;  %v918_v42 = vpop.permute.xlu0 %917  ;;  %v920_v43 = vpop.permute.xlu1 %919 }
 0x368   : > { %v916_v45 = vmax.f32 %v906_v39, %v912_v33  ;;  %v1087_v47 = vsel %vm1085_vm6, %v918_v42, 0.0  ;;  %v923_v50 = vmax.f32 %v915_v44, %v918_v42  ;;  %v1088_v52 = vsel %vm1086_vm7, %v920_v43, 0.0 }
 0x369   : > { %v1068_v48 = vadd.f32 %v1066_v46, %v1046_v41  ;;  %v2324_v49 = vadd.f32 %v1087_v47, %v1067_v37  ;;  %v1921_v42 = vmov 0.0   ;;  %v1130_v46 = vld [vmem:[%s2227_s10] sm:$0xff] }
 0x36a   : > { %v924_v51 = vmax.f32 %v916_v45, %v920_v43  ;;  %v1406_v43 = vsel %vm1119_vm8, 1.0, %v1921_v42  ;;  %v1407_v44 = vsel %vm1120_vm9, 1.0, %v1921_v42 }
 0x36b   : > { %v2326_v53 = vadd.f32 %v1088_v52, %v1068_v48  ;;  %v2328_v54 = vpop.permute.xlu0 %925  ;;  %v2330_v55 = vpop.permute.xlu1 %927  ;;  %v1135_v45 = vadd.f32 %v1407_v44, %v1406_v43 }
 0x36c   : > { %v2333_v56 = vmax.f32 %v923_v50, %v2328_v54  ;;  %v2336_v57 = vmax.f32 %v924_v51, %v2330_v55 }
 0x36d   : > { %v1136_v47 = vadd.f32 %v1135_v45, %v1130_v46 }
 0x36e   : > { %949 = vrot.lane.b32.xlu0 %v2333_v56, %s1920_s17  ;;  %951 = vrot.lane.b32.xlu1 %v2336_v57, %s1920_s17 }
 0x36f   : > { %1137 = vst.msk [vmem:[%s2227_s10] sm:$0xff] %vm1128_vm10, %v1136_v47 }
 0x372   : > { %977 = vrot.lane.b32.xlu0 %v2333_v56, %s1918_s26  ;;  %979 = vrot.lane.b32.xlu1 %v2336_v57, %s1918_s26 }
 0x376   : > { %1005 = vrot.lane.b32.xlu0 %v2333_v56, %s1919_s16  ;;  %1007 = vrot.lane.b32.xlu1 %v2336_v57, %s1919_s16 }
 0x3e0   : > { %v950_v58 = vpop.permute.xlu0 %949  ;;  %v952_v59 = vpop.permute.xlu1 %951 }
 0x3e1   : > { %v955_v60 = vsub.f32 %v2262_v0, %v950_v58  ;;  %v956_v61 = vsub.f32 %v2270_v2, %v952_v59  ;;  %v1047_v14 = vsub.f32 %v2268_v1, %v950_v58  ;;  %v1048_v17 = vsub.f32 %v2272_v3, %v952_v59 }
 0x3e3   : > { %v957_v62 = vmul.f32 1.442695, %v955_v60  ;;  %v959_v63 = vmul.f32 1.442695, %v956_v61  ;;  %v1049_v20 = vmul.f32 1.442695, %v1047_v14 }
 0x3e4   : > { %v978_v5 = vpop.permute.xlu0 %977  ;;  %v980_v6 = vpop.permute.xlu1 %979  ;;  %v1051_v23 = vmul.f32 1.442695, %v1048_v17 }
 0x3e5   : > { %1633 = vpow2.f32 %v957_v62  ;;  %v983_v7 = vsub.f32 %v2262_v0, %v978_v5  ;;  %v984_v8 = vsub.f32 %v2270_v2, %v980_v6  ;;  %v1069_v21 = vsub.f32 %v2268_v1, %v978_v5 }
 0x3e6   : > { %1635 = vpow2.f32 %v959_v63  ;;  %v1070_v24 = vsub.f32 %v2272_v3, %v980_v6 }
 0x3e7   : > { %v985_v9 = vmul.f32 1.442695, %v983_v7  ;;  %v987_v10 = vmul.f32 1.442695, %v984_v8  ;;  %v1071_v26 = vmul.f32 1.442695, %v1069_v21 }
 0x3e8   : > { %v1006_v11 = vpop.permute.xlu0 %1005  ;;  %v1008_v12 = vpop.permute.xlu1 %1007  ;;  %v1073_v29 = vmul.f32 1.442695, %v1070_v24 }
 0x3e9   : > { %1637 = vpow2.f32 %v985_v9  ;;  %v1011_v15 = vsub.f32 %v2262_v0, %v1006_v11  ;;  %v1012_v16 = vsub.f32 %v2270_v2, %v1008_v12  ;;  %v1091_v27 = vsub.f32 %v2268_v1, %v1006_v11 }
 0x3ea   : > { %1639 = vpow2.f32 %v987_v10  ;;  %v1092_v30 = vsub.f32 %v2272_v3, %v1008_v12 }
 0x3eb   : > { %v1013_v18 = vmul.f32 1.442695, %v1011_v15  ;;  %v1015_v19 = vmul.f32 1.442695, %v1012_v16  ;;  %v1093_v32 = vmul.f32 1.442695, %v1091_v27 }
 0x3ec   : > { %v1095_v34 = vmul.f32 1.442695, %v1092_v30 }
 0x3ed   : > { %1641 = vpow2.f32 %v1013_v18 }
 0x3ee   : > { %1643 = vpow2.f32 %v1015_v19 }
 0x3ef   : > { %v1634_v22 = vpop.eup %1633  ;;  %1645 = vpow2.f32 %v1049_v20 }
 0x3f0   : > { %963 = vrot.lane.b32.xlu0 %v1634_v22, %s1919_s16  ;;  %v1636_v25 = vpop.eup %1635  ;;  %1647 = vpow2.f32 %v1051_v23 }
 0x3f1   : > { %965 = vrot.lane.b32.xlu1 %v1636_v25, %s1919_s16  ;;  %1649 = vpow2.f32 %v1071_v26 }
 0x3f2   : > { %1651 = vpow2.f32 %v1073_v29 }
 0x3f3   : > { %v1638_v28 = vpop.eup %1637  ;;  %1653 = vpow2.f32 %v1093_v32 }
 0x3f4   : > { %991 = vrot.lane.b32.xlu0 %v1638_v28, %s1918_s26  ;;  %v1640_v31 = vpop.eup %1639  ;;  %1655 = vpow2.f32 %v1095_v34 }
 0x3f5   : > { %993 = vrot.lane.b32.xlu1 %v1640_v31, %s1918_s26 }
 0x3f7   : > { %v1642_v33 = vpop.eup %1641 }
 0x3f8   : > { %1019 = vrot.lane.b32.xlu0 %v1642_v33, %s1920_s17  ;;  %v1644_v35 = vpop.eup %1643 }
 0x3f9   : > { %1021 = vrot.lane.b32.xlu1 %v1644_v35, %s1920_s17  ;;  %v1646_v36 = vpop.eup %1645 }
 0x3fa   : > { %v1648_v37 = vpop.eup %1647 }
 0x3fb   : > { %v1650_v38 = vpop.eup %1649 }
 0x3fc   : > { %1055 = vrot.lane.b32.xlu0 %v1646_v36, %s1919_s16  ;;  %v1652_v39 = vpop.eup %1651 }
 0x3fd   : > { %1057 = vrot.lane.b32.xlu1 %v1648_v37, %s1919_s16  ;;  %v1654_v40 = vpop.eup %1653 }
 0x3fe   : > { %v1656_v41 = vpop.eup %1655 }
 0x400   : > { %1077 = vrot.lane.b32.xlu0 %v1650_v38, %s1918_s26 }
 0x401   : > { %1079 = vrot.lane.b32.xlu1 %v1652_v39, %s1918_s26  ;;  %s1733_s26 = sshll.u32 %s1922_s4, 4  ;;  %s1734_s26 = int_to_ptr.vmem [resolvable:$false] %s1733_s26 }
 0x402   : > { %s1735_s16 = scalar_lea.vmem %s1734_s26, 256  ;;  %p1736_p8 = scmp.lt.s32.totalorder %s1175_s24, %s1734_s26 }
 0x403   : > { %p1737_p12 = scmp.lt.s32.totalorder %s1735_s16, %s1729_s13 }
 0x404   : > { %1099 = vrot.lane.b32.xlu0 %v1654_v40, %s1920_s17 }
 0x405   : > { %1101 = vrot.lane.b32.xlu1 %v1656_v41, %s1920_s17  ;;  %p1738_p11 = por %p1737_p12, %p1736_p8 }
 0x407   : > { %p1739_p5 = pnand %p1738_p11, %p1732_p1 }
 0x409   : > { %1742 = shalt.err (!%p1739_p5)
}
 0x40a   : > { %s1743_s10 = scalar_lea.hbm %s2393_s27, 128  ;;  %s1747_s0 = scalar_lea.hbm %s2578_s5, 512 }
 0x40b   : > { %p1744_p13 = scmp.ne.s32.totalorder %s2393_s27, %s1743_s10  ;;  %p1748_p6 = scmp.lt.u32.totalorder %s2393_s27, %s2578_s5 }
 0x40c   : > { %p1749_p10 = scmp.lt.u32.totalorder %s1747_s0, %s1743_s10  ;;  %p1751_p4 = scmp.lt.u32.totalorder %s1743_s10, %s2393_s27 }
 0x40d   : > { %p1745_p2 = pnand %p1744_p13, %p2579_p7 }
 0x40e   : > { %p1750_p0 = por %p1749_p10, %p1748_p6 }
 0x40f   : > { %p1746_p9 = pneg %p1745_p2 }
 0x410   : > { %p1752_p3 = por %p1751_p4, %p1750_p0 }
 0x412   : > { %p1753_p1 = pnand %p1752_p3, %p1746_p9 }
 0x414   : > { %1756 = shalt.err (!%p1753_p1)
}
 0x415   : > { %1492 = dma.vmem_to_hbm [thread:$0]  (%p2579_p7), %s1175_s24, 128, %s2393_s27, %s1144_s3   ;;  %v933_v48 = vsub.f32 %v2262_v0, %v2333_v56  ;;  %v934_v50 = vsub.f32 %v2270_v2, %v2336_v57  ;;  %v1033_v58 = vsub.f32 %v2268_v1, %v2333_v56  ;;  %v1034_v59 = vsub.f32 %v2272_v3, %v2336_v57  ;;  %v1125_v42 = vld [vmem:[%s2225_s7] sm:$0xff] }
 0x416   : > { %vm1107_vm11 = vcmp.eq.s32.totalorder %v2296_v4, 7  ;;  %vm1108_vm12 = vcmp.eq.s32.totalorder %v2306_v13, 7  ;;  %s1159_s14 = sshll.u32 %s2225_s7, 4  ;;  %s2580_s3 = sld [smem:[#allocation27_spill]]  ;;  %s2443_s14 = int_to_ptr.vmem [resolvable:$true] %s1159_s14 }
 0x417   : > { %v935_v51 = vmul.f32 1.442695, %v933_v48  ;;  %v937_v52 = vmul.f32 1.442695, %v934_v50  ;;  %v1035_v60 = vmul.f32 1.442695, %v1033_v58 }
 0x418   : > { %v1037_v61 = vmul.f32 1.442695, %v1034_v59  ;;  %v1109_v31 = vsel %vm1107_vm11, %v2328_v54, 0.0  ;;  %v1110_v34 = vsel %vm1108_vm12, %v2330_v55, 0.0  ;;  %s1139_s4 = scalar_lea.sflag [#allocation5], %s2199_s21  ;;  %s1757_s26 = scalar_lea.vmem %s2443_s14, 128 }
 0x419   : > { %1657 = vpow2.f32 %v935_v51  ;;  %v1111_v35 = vadd.f32 %v1109_v31, %v2324_v49  ;;  %v1112_v38 = vadd.f32 %v1110_v34, %v2326_v53  ;;  %p1758_p8 = scmp.ne.s32.totalorder %s2443_s14, %s1757_s26  ;;  %s1923_s16 = smov [#allocation8]  }
 0x41a   : > { %1659 = vpow2.f32 %v937_v52  ;;  %s1761_s25 = sshll.u32 %s1923_s16, 4  ;;  %s1762_s25 = int_to_ptr.vmem [resolvable:$false] %s1761_s25 }
 0x41b   : > { %1661 = vpow2.f32 %v1035_v60  ;;  %p1759_p12 = pnand %p1758_p8, %p2579_p7  ;;  %s1763_s10 = scalar_lea.vmem %s1762_s25, 256 }
 0x41c   : > { %1663 = vpow2.f32 %v1037_v61  ;;  %s2441_s13 = scalar_lea.hbm %s2580_s3, %s1411_s18  ;;  %p1764_p5 = scmp.lt.s32.totalorder %s2443_s14, %s1762_s25 }
 0x41d   : > { %p1760_p11 = pneg %p1759_p12  ;;  %p1765_p13 = scmp.lt.s32.totalorder %s1763_s10, %s1757_s26 }
 0x41f   : > { %p1766_p2 = por %p1765_p13, %p1764_p5 }
 0x421   : > { %p1767_p9 = pnand %p1766_p2, %p1760_p11 }
 0x423   : > { %v1658_v0 = vpop.eup %1657 }
 0x424   : > { %v1660_v2 = vpop.eup %1659 }
 0x425   : > { %v1662_v12 = vpop.eup %1661 }
 0x426   : > { %v1664_v16 = vpop.eup %1663 }
 0x462   : > { %v964_v62 = vpop.permute.xlu0 %963 }
 0x463   : > { %v966_v63 = vpop.permute.xlu1 %965  ;;  %v969_v6 = vadd.f32 %v1658_v0, %v964_v62 }
 0x464   : > { %v970_v8 = vadd.f32 %v1660_v2, %v966_v63 }
 0x466   : > { %v992_v5 = vpop.permute.xlu0 %991 }
 0x467   : > { %v994_v7 = vpop.permute.xlu1 %993  ;;  %v997_v9 = vadd.f32 %v992_v5, %v969_v6 }
 0x468   : > { %v998_v1 = vadd.f32 %v994_v7, %v970_v8 }
 0x46a   : > { %v1020_v10 = vpop.permute.xlu0 %1019 }
 0x46b   : > { %v1025_v11 = vadd.f32 %v1020_v10, %v997_v9  ;;  %v1022_v14 = vpop.permute.xlu1 %1021 }
 0x46c   : > { %v1026_v3 = vadd.f32 %v1022_v14, %v998_v1 }
 0x46d   : > { %v1039_v15 = vadd.f32 %v1662_v12, %v1025_v11 }
 0x46e   : > { %v1056_v17 = vpop.permute.xlu0 %1055  ;;  %v1040_v18 = vadd.f32 %v1664_v16, %v1026_v3 }
 0x46f   : > { %v1058_v19 = vpop.permute.xlu1 %1057  ;;  %v1061_v21 = vadd.f32 %v1056_v17, %v1039_v15 }
 0x470   : > { %v1062_v23 = vadd.f32 %v1058_v19, %v1040_v18 }
 0x472   : > { %v1078_v20 = vpop.permute.xlu0 %1077 }
 0x473   : > { %v1080_v22 = vpop.permute.xlu1 %1079  ;;  %v1083_v24 = vadd.f32 %v1078_v20, %v1061_v21 }
 0x474   : > { %v1084_v26 = vadd.f32 %v1080_v22, %v1062_v23 }
 0x476   : > { %v1100_v25 = vpop.permute.xlu0 %1099 }
 0x477   : > { %v1105_v27 = vadd.f32 %v1100_v25, %v1083_v24  ;;  %v1102_v28 = vpop.permute.xlu1 %1101 }
 0x478   : > { %v1106_v29 = vadd.f32 %v1102_v28, %v1084_v26 }
 0x479   : > { %1665 = vlog2.f32 %v1105_v27 }
 0x47a   : > { %1667 = vlog2.f32 %v1106_v29 }
 0x483   : > { %v1666_v30 = vpop.eup %1665 }
 0x484   : > { %v1114_v32 = vmul.f32 0.6931472, %v1666_v30  ;;  %v1668_v33 = vpop.eup %1667 }
 0x485   : > { %v1116_v37 = vmul.f32 0.6931472, %v1668_v33 }
 0x486   : > { %v1117_v36 = vadd.f32 %v1114_v32, %v2333_v56 }
 0x487   : > { %v1118_v40 = vadd.f32 %v1116_v37, %v2336_v57 }
 0x488   : > { %v1121_v39 = vsub.f32 %v1117_v36, %v1111_v35 }
 0x489   : > { %v1122_v41 = vsub.f32 %v1118_v40, %v1112_v38 }
 0x48a   : > { %v1123_v54 = vsel %vm1119_vm8, %v1121_v39, 0.0 }
 0x48b   : > { %v1124_v55 = vsel %vm1120_vm9, %v1122_v41, 0.0 }
 0x48c   : > { %v1126_v49 = vadd.f32 %v1124_v55, %v1123_v54 }
 0x48e   : > { %v1127_v43 = vadd.f32 %v1126_v49, %v1125_v42 }
 0x490   : > { %1129 = vst.msk [vmem:[%s2225_s7] sm:$0xff] %vm1128_vm10, %v1127_v43 }
 0x491   : > { %1770 = shalt.err (!%p1767_p9)
}
 0x492   : > { %s1771_s21 = scalar_lea.hbm %s2441_s13, 128  ;;  %s1775_s17 = scalar_lea.hbm %s2580_s3, 512 }
 0x493   : > { %p1772_p6 = scmp.ne.s32.totalorder %s2441_s13, %s1771_s21  ;;  %p1776_p4 = scmp.lt.u32.totalorder %s2441_s13, %s2580_s3 }
 0x494   : > { %p1777_p3 = scmp.lt.u32.totalorder %s1775_s17, %s1771_s21  ;;  %p1779_p8 = scmp.lt.u32.totalorder %s1771_s21, %s2441_s13 }
 0x495   : > { %p1773_p10 = pnand %p1772_p6, %p2579_p7 }
 0x496   : > { %p1778_p1 = por %p1777_p3, %p1776_p4 }
 0x497   : > { %p1774_p0 = pneg %p1773_p10 }
 0x498   : > { %p1780_p12 = por %p1779_p8, %p1778_p1 }
 0x49a   : > { %p1781_p11 = pnand %p1780_p12, %p1774_p0 }
 0x49c   : > { %1784 = shalt.err (!%p1781_p11)
}
 0x49d   : > { %1491 = dma.vmem_to_hbm [thread:$0]  (%p2579_p7), %s2443_s14, 128, %s2441_s13, %s1139_s4  }
 0x49e PF: > { %s2581_s15 = sld [smem:[#allocation15_spill]]  ;;  %s2582_s8 = sld [smem:[#allocation21_spill]] }
 0x49f   : > { %p1510_p5 = scmp.ge.s32.totalorder %s1903_s30, 2 }
 0x4a4   : > { %s1186_s27 = sand.u32 1, %s2581_s15   ;;  %p2583_p13 = scmp.ne.s32.totalorder %s2582_s8, 0 }
 0x4a5   : > { %s1187_s24 = scalar_lea.sflag [#allocation5], %s1186_s27 }
 0x4a6   : > { %p1503_p2 = pnand %p1510_p5, %p2583_p13 }
 0x4a8   : > { %1846 = dma.done.wait (!%p1503_p2), %s1187_s24, 128  }
 0x4a9   : > { %1848 = vsyncadd (!%p1503_p2), %s1187_s24, 4294967168  ;;  %s1196_s26 = scalar_lea.sflag [#allocation10], %s1186_s27 }
 0x4aa   : > { %1850 = dma.done.wait (!%p1503_p2), %s1196_s26, 128  }
 0x4ab   : > { %1852 = vsyncadd (!%p1503_p2), %s1196_s26, 4294967168  ;;  %s28_s30 = sadd.s32 1, %s1903_s30   ;;  %s2585_s24 = sld [smem:[#allocation19_spill]] }
 0x4ac   : > { %p2474_p9 = scmp.ge.s32.totalorder %s28_s30, 10   ;;  %s2586_s27 = sld [smem:[#allocation22_spill]] }
 0x4ad   : > { %s2587_s14 = sld [smem:[#allocation23_spill]]  ;;  %s2588_s18 = smov %s1859_s19 }
 0x4ae   : > { %s2589_s19 = smov %s1863_s20  ;;  %s2590_s20 = smov %s2143_s9 }
 0x4af   : > { %s2591_s21 = smov %s1871_s22  ;;  %s2592_s22 = smov %s1875_s23 }
 0x4b0   : > { %s2593_s23 = smov %s2151_s2  ;;  %s2594_s25 = smov %s1895_s28 }
 0x4b1   : > { %s2595_s26 = smov %s1899_s29  ;;  %s2597_s29 = smov %s2607_s6 }
 0x4b2   :  { %27 = sbr.rel (!%p2474_p9) target bundleno = 20 (0x14), region = 132 }
 0x4b3   : > { %s2596_s28 = smov %s2587_s14 }
 0x4b9   :  { %1201 = vsyncpa [#allocation4], 1 }
 0x4ba   :  { %1203 = vsyncpa [#allocation4 + $0x1], 1 }
 0x4bb   :  { %1204 = vsyncpa [#allocation7], 1 }
 0x4bc   :  { %1206 = vsyncpa [#allocation7 + $0x1], 1 }
 0x4bd   :  { %1207 = vsyncpa [#allocation5], 1 }
 0x4be   :  { %1209 = vsyncpa [#allocation5 + $0x1], 1 }
 0x4bf   :  { %1210 = vsyncpa [#allocation10], 1 }
 0x4c0   :  { %1212 = vsyncpa [#allocation10 + $0x1], 1 }

</bundles_post_ra>
